<compile_context>
chip_gen: v5e
topology: v5e:2x2
jax: 0.10.0
libtpu: 0.0.40
codegen_flags: <defaults>
</compile_context>

<pallas_src>
import functools

import jax
import jax.numpy as jnp
from jax import lax
from jax.experimental import pallas as pl
from jax.experimental.pallas import tpu as pltpu


_NEG_BIG = -1e30  # drives padded-class logits to ~0 probability without inf/nan


def _fused_emb_fc_logsoftmax_kernel(tok_ref, emb_ref, w_ref, b_ref, o_ref):
    """One batch tile of: gather-embed -> flatten -> x @ W + b -> log_softmax.

    tok_ref: (TB, L)      int32  token ids for this batch tile
    emb_ref: (V, D)       bf16   full embedding table (row 0 == PAD, zeroed)
    w_ref:   (L*D, Cpad)  bf16   FC weight, classes zero-padded to Cpad lanes
    b_ref:   (1, Cpad)    f32    FC bias, padded classes set to -1e30
    o_ref:   (TB, Cpad)   f32    log-probabilities (padded columns are junk)
    """
    tb, l_len = tok_ref.shape
    v, d = emb_ref.shape
    c_pad = o_ref.shape[1]

    tok = tok_ref[...]                       # (TB, L) int32
    emb = emb_ref[...]                       # (V, D)  bf16

    acc = jnp.zeros((tb, c_pad), jnp.float32)
    # Fused gather + FC, reassociated as
    #   logits += (onehot(tok[:, l]) @ E) @ W[l*D:(l+1)*D, :]
    # which keeps everything on the MXU and avoids lane-dim reshapes.
    for l in range(l_len):
        tok_l = tok[:, l:l + 1]                                         # (TB, 1)
        onehot = (tok_l == lax.broadcasted_iota(jnp.int32, (tb, v), 1))
        onehot = onehot.astype(emb.dtype)                               # (TB, V)
        e_l = jnp.dot(onehot, emb, preferred_element_type=jnp.float32)  # (TB, D)
        w_l = w_ref[l * d:(l + 1) * d, :]                               # (D, Cpad)
        acc = acc + jnp.dot(e_l.astype(w_l.dtype), w_l,
                            preferred_element_type=jnp.float32)

    logits = acc + b_ref[...]                # padded lanes -> ~ -1e30
    # numerically stable log_softmax over the (lane-dense) class axis
    m = jnp.max(logits, axis=-1, keepdims=True)
    shifted = logits - m
    lse = jnp.log(jnp.sum(jnp.exp(shifted), axis=-1, keepdims=True))
    o_ref[...] = (shifted - lse).astype(o_ref.dtype)


def model_forward(tokens, emb_table, fc_w, fc_b, *, tile_b=128, class_pad=128):
    """Full forward pass matching the PyTorch module.

    tokens:    (B, L) int32 token ids
    emb_table: (V, D) f32 embedding table (row `padding_idx` zeroed by caller)
    fc_w:      (L*D, C) f32   (transpose of PyTorch nn.Linear.weight)
    fc_b:      (C,) f32
    returns:   (B, C) f32 log-probabilities
    """
    B, L = tokens.shape
    V, D = emb_table.shape
    F, C = fc_w.shape
    assert F == L * D

    # --- lane-dense class padding (C -> multiple of 128) ---
    c_pad = ((C + class_pad - 1) // class_pad) * class_pad
    w_p = jnp.zeros((F, c_pad), fc_w.dtype).at[:, :C].set(fc_w)
    b_p = jnp.full((1, c_pad), _NEG_BIG, jnp.float32).at[0, :C].set(
        fc_b.astype(jnp.float32))

    # --- bf16 operands for the MXU (accumulation stays f32 in-kernel) ---
    emb_bf16 = emb_table.astype(jnp.bfloat16)
    w_bf16 = w_p.astype(jnp.bfloat16)

    # --- pad batch up to a multiple of tile_b (PAD id 0 -> zero embedding) ---
    n_tiles = (B + tile_b - 1) // tile_b
    b_pad = n_tiles * tile_b
    tok_p = tokens.astype(jnp.int32)
    if b_pad != B:
        tok_p = jnp.pad(tok_p, ((0, b_pad - B), (0, 0)))

    out = pl.pallas_call(
        _fused_emb_fc_logsoftmax_kernel,
        out_shape=jax.ShapeDtypeStruct((b_pad, c_pad), jnp.float32),
        grid_spec=pltpu.PrefetchScalarGridSpec(
            num_scalar_prefetch=0,
            grid=(n_tiles,),
            in_specs=[
                pl.BlockSpec((tile_b, L), lambda i: (i, 0)),   # token tile
                pl.BlockSpec((V, D), lambda i: (0, 0)),        # full emb table
                pl.BlockSpec((F, c_pad), lambda i: (0, 0)),    # full FC weight
                pl.BlockSpec((1, c_pad), lambda i: (0, 0)),    # bias
            ],
            out_specs=pl.BlockSpec((tile_b, c_pad), lambda i: (i, 0)),
        ),
        compiler_params=pltpu.CompilerParams(
            # >=2-wide parallel grid lets v7x shard tiles across its 2 TCs.
            dimension_semantics=("parallel",),
        ),
    )(tok_p, emb_bf16, w_bf16, b_p)

    return out[:B, :C]


if __name__ == "__main__":
    # small synthetic config (stands in for config.ws / max_len / dims)
    VOCAB = 64          # len(config.ws)
    MAX_LEN = 8         # config.max_len
    EMB_DIM = 32        # config.NUM_EMBEDDING_DIM
    NUM_CLASSES = 4     # config.NUM_CLASSES
    BATCH = 256         # two 128-row tiles -> 2-wide parallel grid
    PAD = 0             # config.ws.PAD

    key = jax.random.PRNGKey(0)
    k_tok, k_emb, k_w, k_b = jax.random.split(key, 4)

    tokens = jax.random.randint(k_tok, (BATCH, MAX_LEN), 0, VOCAB, dtype=jnp.int32)

    emb_table = 0.02 * jax.random.normal(k_emb, (VOCAB, EMB_DIM), dtype=jnp.float32)
    emb_table = emb_table.at[PAD].set(0.0)   # padding_idx semantics

    F_IN = MAX_LEN * EMB_DIM
    fc_w = (jax.random.normal(k_w, (F_IN, NUM_CLASSES), dtype=jnp.float32)
            / jnp.sqrt(jnp.float32(F_IN)))
    fc_b = 0.01 * jax.random.normal(k_b, (NUM_CLASSES,), dtype=jnp.float32)

    fwd = jax.jit(functools.partial(model_forward, tile_b=128))
    out = jax.block_until_ready(fwd(tokens, emb_table, fc_w, fc_b))

    # pure-JAX f32 reference (kernel uses bf16 operands -> loose tolerance)
    x_flat = jnp.take(emb_table, tokens, axis=0).reshape(BATCH, -1)
    ref = jax.nn.log_softmax(x_flat @ fc_w + fc_b, axis=-1)

    assert out.shape == (BATCH, NUM_CLASSES)
    assert jnp.allclose(out, ref, atol=1e-2, rtol=1e-2), \
        float(jnp.max(jnp.abs(out - ref)))

    print("KERNEL_OK")
</pallas_src>

<mosaic_0001>
module attributes {stable_mosaic.version = 11 : i64} {
  func.func @_fused_emb_fc_logsoftmax_kernel(%arg0: i32, %arg1: memref<128x8xi32, #tpu.memory_space<vmem>>, %arg2: memref<64x32xbf16, #tpu.memory_space<vmem>>, %arg3: memref<256x128xbf16, #tpu.memory_space<vmem>>, %arg4: memref<1x128xf32, #tpu.memory_space<vmem>>, %arg5: memref<128x128xf32, #tpu.memory_space<vmem>>) attributes {dimension_semantics = [#tpu.dimension_semantics<parallel>], iteration_bounds = array<i64: 2>, scalar_prefetch = 0 : i64, scratch_operands = 0 : i64, tpu.core_type = #tpu.core_type<tc>, window_params = [{transform_indices = @transform_0, window_bounds = array<i64: 128, 8>}, {pipeline_mode = #tpu.pipeline_mode<synchronous>, transform_indices = @transform_1, window_bounds = array<i64: 64, 32>}, {pipeline_mode = #tpu.pipeline_mode<synchronous>, transform_indices = @transform_2, window_bounds = array<i64: 256, 128>}, {pipeline_mode = #tpu.pipeline_mode<synchronous>, transform_indices = @transform_3, window_bounds = array<i64: 1, 128>}, {transform_indices = @transform_4, window_bounds = array<i64: 128, 128>}]} {
    %c0 = arith.constant 0 : index
    %c0_0 = arith.constant 0 : index
    %0 = vector.load %arg1[%c0, %c0_0] : memref<128x8xi32, #tpu.memory_space<vmem>>, vector<128x8xi32>
    %c0_1 = arith.constant 0 : index
    %c0_2 = arith.constant 0 : index
    %1 = vector.load %arg2[%c0_1, %c0_2] : memref<64x32xbf16, #tpu.memory_space<vmem>>, vector<64x32xbf16>
    %cst = arith.constant 0.000000e+00 : f32
    %2 = vector.broadcast %cst : f32 to vector<128x128xf32>
    %3 = vector.extract_strided_slice %0 {offsets = [0, 0], sizes = [128, 1], strides = [1, 1]} : vector<128x8xi32> to vector<128x1xi32>
    %4 = tpu.iota {dimensions = array<i32: 1>} : vector<128x64xi32>
    %5 = vector.broadcast %3 : vector<128x1xi32> to vector<128x64xi32>
    %6 = arith.cmpi eq, %5, %4 : vector<128x64xi32>
    %7 = arith.extui %6 : vector<128x64xi1> to vector<128x64xi32>
    %8 = arith.sitofp %7 : vector<128x64xi32> to vector<128x64xf32>
    %9 = arith.truncf %8 : vector<128x64xf32> to vector<128x64xbf16>
    %cst_3 = arith.constant dense<0.000000e+00> : vector<128x32xf32>
    %10 = tpu.matmul %9, %1, %cst_3 {dimension_numbers = #tpu.dot_dimension_numbers<[1], [0], [0], [1], [0, 0, 1, 1], [], []>} : vector<128x64xbf16>, vector<64x32xbf16>, vector<128x32xf32> -> vector<128x32xf32>
    %c0_4 = arith.constant 0 : index
    %c0_5 = arith.constant 0 : index
    %11 = vector.load %arg3[%c0_4, %c0_5] : memref<256x128xbf16, #tpu.memory_space<vmem>>, vector<32x128xbf16>
    %12 = arith.truncf %10 : vector<128x32xf32> to vector<128x32xbf16>
    %cst_6 = arith.constant dense<0.000000e+00> : vector<128x128xf32>
    %13 = tpu.matmul %12, %11, %cst_6 {dimension_numbers = #tpu.dot_dimension_numbers<[1], [0], [0], [1], [0, 0, 1, 1], [], []>} : vector<128x32xbf16>, vector<32x128xbf16>, vector<128x128xf32> -> vector<128x128xf32>
    %14 = arith.addf %2, %13 : vector<128x128xf32>
    %15 = vector.extract_strided_slice %0 {offsets = [0, 1], sizes = [128, 1], strides = [1, 1]} : vector<128x8xi32> to vector<128x1xi32>
    %16 = tpu.iota {dimensions = array<i32: 1>} : vector<128x64xi32>
    %17 = vector.broadcast %15 : vector<128x1xi32> to vector<128x64xi32>
    %18 = arith.cmpi eq, %17, %16 : vector<128x64xi32>
    %19 = arith.extui %18 : vector<128x64xi1> to vector<128x64xi32>
    %20 = arith.sitofp %19 : vector<128x64xi32> to vector<128x64xf32>
    %21 = arith.truncf %20 : vector<128x64xf32> to vector<128x64xbf16>
    %cst_7 = arith.constant dense<0.000000e+00> : vector<128x32xf32>
    %22 = tpu.matmul %21, %1, %cst_7 {dimension_numbers = #tpu.dot_dimension_numbers<[1], [0], [0], [1], [0, 0, 1, 1], [], []>} : vector<128x64xbf16>, vector<64x32xbf16>, vector<128x32xf32> -> vector<128x32xf32>
    %c32 = arith.constant 32 : index
    %c0_8 = arith.constant 0 : index
    %23 = vector.load %arg3[%c32, %c0_8] : memref<256x128xbf16, #tpu.memory_space<vmem>>, vector<32x128xbf16>
    %24 = arith.truncf %22 : vector<128x32xf32> to vector<128x32xbf16>
    %cst_9 = arith.constant dense<0.000000e+00> : vector<128x128xf32>
    %25 = tpu.matmul %24, %23, %cst_9 {dimension_numbers = #tpu.dot_dimension_numbers<[1], [0], [0], [1], [0, 0, 1, 1], [], []>} : vector<128x32xbf16>, vector<32x128xbf16>, vector<128x128xf32> -> vector<128x128xf32>
    %26 = arith.addf %14, %25 : vector<128x128xf32>
    %27 = vector.extract_strided_slice %0 {offsets = [0, 2], sizes = [128, 1], strides = [1, 1]} : vector<128x8xi32> to vector<128x1xi32>
    %28 = tpu.iota {dimensions = array<i32: 1>} : vector<128x64xi32>
    %29 = vector.broadcast %27 : vector<128x1xi32> to vector<128x64xi32>
    %30 = arith.cmpi eq, %29, %28 : vector<128x64xi32>
    %31 = arith.extui %30 : vector<128x64xi1> to vector<128x64xi32>
    %32 = arith.sitofp %31 : vector<128x64xi32> to vector<128x64xf32>
    %33 = arith.truncf %32 : vector<128x64xf32> to vector<128x64xbf16>
    %cst_10 = arith.constant dense<0.000000e+00> : vector<128x32xf32>
    %34 = tpu.matmul %33, %1, %cst_10 {dimension_numbers = #tpu.dot_dimension_numbers<[1], [0], [0], [1], [0, 0, 1, 1], [], []>} : vector<128x64xbf16>, vector<64x32xbf16>, vector<128x32xf32> -> vector<128x32xf32>
    %c64 = arith.constant 64 : index
    %c0_11 = arith.constant 0 : index
    %35 = vector.load %arg3[%c64, %c0_11] : memref<256x128xbf16, #tpu.memory_space<vmem>>, vector<32x128xbf16>
    %36 = arith.truncf %34 : vector<128x32xf32> to vector<128x32xbf16>
    %cst_12 = arith.constant dense<0.000000e+00> : vector<128x128xf32>
    %37 = tpu.matmul %36, %35, %cst_12 {dimension_numbers = #tpu.dot_dimension_numbers<[1], [0], [0], [1], [0, 0, 1, 1], [], []>} : vector<128x32xbf16>, vector<32x128xbf16>, vector<128x128xf32> -> vector<128x128xf32>
    %38 = arith.addf %26, %37 : vector<128x128xf32>
    %39 = vector.extract_strided_slice %0 {offsets = [0, 3], sizes = [128, 1], strides = [1, 1]} : vector<128x8xi32> to vector<128x1xi32>
    %40 = tpu.iota {dimensions = array<i32: 1>} : vector<128x64xi32>
    %41 = vector.broadcast %39 : vector<128x1xi32> to vector<128x64xi32>
    %42 = arith.cmpi eq, %41, %40 : vector<128x64xi32>
    %43 = arith.extui %42 : vector<128x64xi1> to vector<128x64xi32>
    %44 = arith.sitofp %43 : vector<128x64xi32> to vector<128x64xf32>
    %45 = arith.truncf %44 : vector<128x64xf32> to vector<128x64xbf16>
    %cst_13 = arith.constant dense<0.000000e+00> : vector<128x32xf32>
    %46 = tpu.matmul %45, %1, %cst_13 {dimension_numbers = #tpu.dot_dimension_numbers<[1], [0], [0], [1], [0, 0, 1, 1], [], []>} : vector<128x64xbf16>, vector<64x32xbf16>, vector<128x32xf32> -> vector<128x32xf32>
    %c96 = arith.constant 96 : index
    %c0_14 = arith.constant 0 : index
    %47 = vector.load %arg3[%c96, %c0_14] : memref<256x128xbf16, #tpu.memory_space<vmem>>, vector<32x128xbf16>
    %48 = arith.truncf %46 : vector<128x32xf32> to vector<128x32xbf16>
    %cst_15 = arith.constant dense<0.000000e+00> : vector<128x128xf32>
    %49 = tpu.matmul %48, %47, %cst_15 {dimension_numbers = #tpu.dot_dimension_numbers<[1], [0], [0], [1], [0, 0, 1, 1], [], []>} : vector<128x32xbf16>, vector<32x128xbf16>, vector<128x128xf32> -> vector<128x128xf32>
    %50 = arith.addf %38, %49 : vector<128x128xf32>
    %51 = vector.extract_strided_slice %0 {offsets = [0, 4], sizes = [128, 1], strides = [1, 1]} : vector<128x8xi32> to vector<128x1xi32>
    %52 = tpu.iota {dimensions = array<i32: 1>} : vector<128x64xi32>
    %53 = vector.broadcast %51 : vector<128x1xi32> to vector<128x64xi32>
    %54 = arith.cmpi eq, %53, %52 : vector<128x64xi32>
    %55 = arith.extui %54 : vector<128x64xi1> to vector<128x64xi32>
    %56 = arith.sitofp %55 : vector<128x64xi32> to vector<128x64xf32>
    %57 = arith.truncf %56 : vector<128x64xf32> to vector<128x64xbf16>
    %cst_16 = arith.constant dense<0.000000e+00> : vector<128x32xf32>
    %58 = tpu.matmul %57, %1, %cst_16 {dimension_numbers = #tpu.dot_dimension_numbers<[1], [0], [0], [1], [0, 0, 1, 1], [], []>} : vector<128x64xbf16>, vector<64x32xbf16>, vector<128x32xf32> -> vector<128x32xf32>
    %c128 = arith.constant 128 : index
    %c0_17 = arith.constant 0 : index
    %59 = vector.load %arg3[%c128, %c0_17] : memref<256x128xbf16, #tpu.memory_space<vmem>>, vector<32x128xbf16>
    %60 = arith.truncf %58 : vector<128x32xf32> to vector<128x32xbf16>
    %cst_18 = arith.constant dense<0.000000e+00> : vector<128x128xf32>
    %61 = tpu.matmul %60, %59, %cst_18 {dimension_numbers = #tpu.dot_dimension_numbers<[1], [0], [0], [1], [0, 0, 1, 1], [], []>} : vector<128x32xbf16>, vector<32x128xbf16>, vector<128x128xf32> -> vector<128x128xf32>
    %62 = arith.addf %50, %61 : vector<128x128xf32>
    %63 = vector.extract_strided_slice %0 {offsets = [0, 5], sizes = [128, 1], strides = [1, 1]} : vector<128x8xi32> to vector<128x1xi32>
    %64 = tpu.iota {dimensions = array<i32: 1>} : vector<128x64xi32>
    %65 = vector.broadcast %63 : vector<128x1xi32> to vector<128x64xi32>
    %66 = arith.cmpi eq, %65, %64 : vector<128x64xi32>
    %67 = arith.extui %66 : vector<128x64xi1> to vector<128x64xi32>
    %68 = arith.sitofp %67 : vector<128x64xi32> to vector<128x64xf32>
    %69 = arith.truncf %68 : vector<128x64xf32> to vector<128x64xbf16>
    %cst_19 = arith.constant dense<0.000000e+00> : vector<128x32xf32>
    %70 = tpu.matmul %69, %1, %cst_19 {dimension_numbers = #tpu.dot_dimension_numbers<[1], [0], [0], [1], [0, 0, 1, 1], [], []>} : vector<128x64xbf16>, vector<64x32xbf16>, vector<128x32xf32> -> vector<128x32xf32>
    %c160 = arith.constant 160 : index
    %c0_20 = arith.constant 0 : index
    %71 = vector.load %arg3[%c160, %c0_20] : memref<256x128xbf16, #tpu.memory_space<vmem>>, vector<32x128xbf16>
    %72 = arith.truncf %70 : vector<128x32xf32> to vector<128x32xbf16>
    %cst_21 = arith.constant dense<0.000000e+00> : vector<128x128xf32>
    %73 = tpu.matmul %72, %71, %cst_21 {dimension_numbers = #tpu.dot_dimension_numbers<[1], [0], [0], [1], [0, 0, 1, 1], [], []>} : vector<128x32xbf16>, vector<32x128xbf16>, vector<128x128xf32> -> vector<128x128xf32>
    %74 = arith.addf %62, %73 : vector<128x128xf32>
    %75 = vector.extract_strided_slice %0 {offsets = [0, 6], sizes = [128, 1], strides = [1, 1]} : vector<128x8xi32> to vector<128x1xi32>
    %76 = tpu.iota {dimensions = array<i32: 1>} : vector<128x64xi32>
    %77 = vector.broadcast %75 : vector<128x1xi32> to vector<128x64xi32>
    %78 = arith.cmpi eq, %77, %76 : vector<128x64xi32>
    %79 = arith.extui %78 : vector<128x64xi1> to vector<128x64xi32>
    %80 = arith.sitofp %79 : vector<128x64xi32> to vector<128x64xf32>
    %81 = arith.truncf %80 : vector<128x64xf32> to vector<128x64xbf16>
    %cst_22 = arith.constant dense<0.000000e+00> : vector<128x32xf32>
    %82 = tpu.matmul %81, %1, %cst_22 {dimension_numbers = #tpu.dot_dimension_numbers<[1], [0], [0], [1], [0, 0, 1, 1], [], []>} : vector<128x64xbf16>, vector<64x32xbf16>, vector<128x32xf32> -> vector<128x32xf32>
    %c192 = arith.constant 192 : index
    %c0_23 = arith.constant 0 : index
    %83 = vector.load %arg3[%c192, %c0_23] : memref<256x128xbf16, #tpu.memory_space<vmem>>, vector<32x128xbf16>
    %84 = arith.truncf %82 : vector<128x32xf32> to vector<128x32xbf16>
    %cst_24 = arith.constant dense<0.000000e+00> : vector<128x128xf32>
    %85 = tpu.matmul %84, %83, %cst_24 {dimension_numbers = #tpu.dot_dimension_numbers<[1], [0], [0], [1], [0, 0, 1, 1], [], []>} : vector<128x32xbf16>, vector<32x128xbf16>, vector<128x128xf32> -> vector<128x128xf32>
    %86 = arith.addf %74, %85 : vector<128x128xf32>
    %87 = vector.extract_strided_slice %0 {offsets = [0, 7], sizes = [128, 1], strides = [1, 1]} : vector<128x8xi32> to vector<128x1xi32>
    %88 = tpu.iota {dimensions = array<i32: 1>} : vector<128x64xi32>
    %89 = vector.broadcast %87 : vector<128x1xi32> to vector<128x64xi32>
    %90 = arith.cmpi eq, %89, %88 : vector<128x64xi32>
    %91 = arith.extui %90 : vector<128x64xi1> to vector<128x64xi32>
    %92 = arith.sitofp %91 : vector<128x64xi32> to vector<128x64xf32>
    %93 = arith.truncf %92 : vector<128x64xf32> to vector<128x64xbf16>
    %cst_25 = arith.constant dense<0.000000e+00> : vector<128x32xf32>
    %94 = tpu.matmul %93, %1, %cst_25 {dimension_numbers = #tpu.dot_dimension_numbers<[1], [0], [0], [1], [0, 0, 1, 1], [], []>} : vector<128x64xbf16>, vector<64x32xbf16>, vector<128x32xf32> -> vector<128x32xf32>
    %c224 = arith.constant 224 : index
    %c0_26 = arith.constant 0 : index
    %95 = vector.load %arg3[%c224, %c0_26] : memref<256x128xbf16, #tpu.memory_space<vmem>>, vector<32x128xbf16>
    %96 = arith.truncf %94 : vector<128x32xf32> to vector<128x32xbf16>
    %cst_27 = arith.constant dense<0.000000e+00> : vector<128x128xf32>
    %97 = tpu.matmul %96, %95, %cst_27 {dimension_numbers = #tpu.dot_dimension_numbers<[1], [0], [0], [1], [0, 0, 1, 1], [], []>} : vector<128x32xbf16>, vector<32x128xbf16>, vector<128x128xf32> -> vector<128x128xf32>
    %98 = arith.addf %86, %97 : vector<128x128xf32>
    %c0_28 = arith.constant 0 : index
    %c0_29 = arith.constant 0 : index
    %99 = vector.load %arg4[%c0_28, %c0_29] : memref<1x128xf32, #tpu.memory_space<vmem>>, vector<1x128xf32>
    %100 = vector.broadcast %99 : vector<1x128xf32> to vector<128x128xf32>
    %101 = arith.addf %98, %100 : vector<128x128xf32>
    %cst_30 = arith.constant dense<0xFF800000> : vector<128xf32>
    %102 = vector.multi_reduction <maximumf>, %101, %cst_30 [1] : vector<128x128xf32> to vector<128xf32>
    %103 = vector.shape_cast %102 : vector<128xf32> to vector<128x1xf32>
    %104 = vector.broadcast %103 : vector<128x1xf32> to vector<128x128xf32>
    %105 = arith.subf %101, %104 : vector<128x128xf32>
    %106 = math.exp %105 : vector<128x128xf32>
    %cst_31 = arith.constant dense<0.000000e+00> : vector<128xf32>
    %107 = vector.multi_reduction <add>, %106, %cst_31 [1] : vector<128x128xf32> to vector<128xf32>
    %108 = vector.shape_cast %107 : vector<128xf32> to vector<128x1xf32>
    %109 = math.log %108 : vector<128x1xf32>
    %110 = vector.broadcast %109 : vector<128x1xf32> to vector<128x128xf32>
    %111 = arith.subf %105, %110 : vector<128x128xf32>
    %c0_32 = arith.constant 0 : index
    %c0_33 = arith.constant 0 : index
    %112 = vector.load %arg5[%c0_32, %c0_33] : memref<128x128xf32, #tpu.memory_space<vmem>>, vector<128x128xf32>
    tpu.vector_store %arg5[%c0_32, %c0_33], %111 {strides = array<i32>} : memref<128x128xf32, #tpu.memory_space<vmem>>, vector<128x128xf32>,
    return
  }
  func.func @transform_0(%arg0: i32) -> (i32, i32) {
    %c0_i32 = arith.constant 0 : i32
    %c0_i32_0 = arith.constant 0 : i32
    return %arg0, %c0_i32 : i32, i32
  }
  func.func @transform_1(%arg0: i32) -> (i32, i32) {
    %c0_i32 = arith.constant 0 : i32
    %c0_i32_0 = arith.constant 0 : i32
    %c0_i32_1 = arith.constant 0 : i32
    return %c0_i32, %c0_i32_0 : i32, i32
  }
  func.func @transform_2(%arg0: i32) -> (i32, i32) {
    %c0_i32 = arith.constant 0 : i32
    %c0_i32_0 = arith.constant 0 : i32
    %c0_i32_1 = arith.constant 0 : i32
    return %c0_i32, %c0_i32_0 : i32, i32
  }
  func.func @transform_3(%arg0: i32) -> (i32, i32) {
    %c0_i32 = arith.constant 0 : i32
    %c0_i32_0 = arith.constant 0 : i32
    %c0_i32_1 = arith.constant 0 : i32
    return %c0_i32, %c0_i32_0 : i32, i32
  }
  func.func @transform_4(%arg0: i32) -> (i32, i32) {
    %c0_i32 = arith.constant 0 : i32
    %c0_i32_0 = arith.constant 0 : i32
    return %arg0, %c0_i32 : i32, i32
  }
}

</mosaic_0001>

<bundles_post_ra>
// kernel: model_forward.1
= control target key start
LH: loop header
LB: loop body
LE: loop exit
PB: predicated region body
PF: predicated region fallthrough
CT: control target
= control target key end

     0   :  { %s3370_s15 = smov 0   ;;  %s4686_s0 = inlined_call_operand.vmem [shape: s32[256,8], index: 0, kind: input, shape index: {}]   ;;  %s4687_s1 = inlined_call_operand.vmem [shape: bf16[64,32], index: 1, kind: input, shape index: {}]   ;;  %s4688_s2 = inlined_call_operand.vmem [shape: bf16[256,128], index: 2, kind: input, shape index: {}]   ;;  %s4689_s3 = inlined_call_operand.vmem [shape: f32[1,128], index: 3, kind: input, shape index: {}]   ;;  %s4690_s4 = inlined_call_operand.vmem [shape: f32[256,128], index: 4, kind: output, shape index: {}]  }
   0x1 LB: > { %s2794_s16 = sadd.s32 4294967295, %s3334_s15   ;;  %p2798_p0 = scmp.ge.s32.totalorder %s3334_s15, 1  ;;  %s3334_s15 = sphi %s3370_s15, %s14_s15  }
   0x2   : > { %p163_p1 = scmp.lt.s32.totalorder %s3334_s15, 3 }
   0x4   : > { %p164_p2 = pnand %p2798_p0, %p163_p1 }
   0x5   : > { %s2799_s17 = sshll.u32 (!%p164_p2), %s2794_s16, 4 }
   0x6   : > { %167 = sbr.rel (%p164_p2) target bundleno = 1317 (0x525), region = 36  ;;  %p190_p3 = scmp.lt.s32.totalorder (!%p164_p2), %s2799_s17, 31 }
   0xb   : > { %v3336_v0 = vmov 1   ;;  %s4692_s17 = smov (!%p190_p3, %s2799_s17), 31  ;;  %v3450_v16 = vld [vmem:[%s4687_s1 + $0x18] sm:$0xff]  ;;  %v3337_v18 = vmov 0   ;;  %v3477_v19 = vld [vmem:[%s4687_s1 + $0x10] sm:$0xff]  ;;  %v3484_v20 = vld [vmem:[%s4687_s1 + $0x8] sm:$0xff]  ;;  %v226_v24 = vlaneseq }
   0xc   : > { %3179 = vset.pattern.permute.xlu1 %v3336_v0  ;;  %3178 = vset.pattern.permute.xlu0 %v3336_v0  ;;  %s2800_s18 = sshll.u32 %s4692_s17, 3  ;;  %v3492_v21 = vld [vmem:[%s4687_s1] sm:$0xff]  ;;  %v3338_v31 = vmov 0.0   ;;  %vm356_vm2 = vcmask 523264  }
   0xd   : > { %3180 = vset.pattern.permute.xlu2 %v3336_v0  ;;  %s3386_s21 = scalar_lea.vmem %s4686_s0, %s2800_s18  ;;  %574 = vmatpush.bf16.msra.mxu1 %v3450_v16  ;;  %v3500_v27 = vand.u32 127, %v226_v24  ;;  %s4649_s20 = scalar_lea.vmem %s4690_s4, %s2800_s18 }
   0xe   : > { %v3389_v1 = vld [vmem:[%s3386_s21 + $0x10] sm:$0xff]  ;;  %v3392_v2 = vld [vmem:[%s3386_s21] sm:$0xff]  ;;  %v3401_v4 = vld [vmem:[%s3386_s21 + $0x18] sm:$0xff]  ;;  %385 = vmatpush.bf16.msra.mxu0 %v3450_v16 }
   0xf   : > { %449 = vperm.xlu1 %3179, %v3389_v1   ;;  %443 = vperm.xlu0 %3178, %v3392_v2   ;;  %v3397_v3 = vld [vmem:[%s3386_s21 + $0x20] sm:$0xff]  ;;  %v3404_v5 = vld [vmem:[%s3386_s21 + $0x8] sm:$0xff]  ;;  %v3413_v7 = vld [vmem:[%s3386_s21 + $0x38] sm:$0xff] }
  0x10   : > { %455 = vperm.xlu2 %3180, %v3397_v3   ;;  %v3407_v6 = vld [vmem:[%s3386_s21 + $0x28] sm:$0xff]  ;;  %v3416_v8 = vld [vmem:[%s3386_s21 + $0x30] sm:$0xff]  ;;  %v3419_v9 = vld [vmem:[%s3386_s21 + $0x40] sm:$0xff] }
  0x11   : > { %v3425_v10 = vld [vmem:[%s3386_s21 + $0x50] sm:$0xff]  ;;  %v3428_v11 = vld [vmem:[%s3386_s21 + $0x48] sm:$0xff]  ;;  %v3431_v12 = vld [vmem:[%s3386_s21 + $0x58] sm:$0xff]  ;;  %575 = vmatpush.bf16.msra.mxu1 %v3477_v19 }
  0x12   : > { %v3437_v13 = vld [vmem:[%s3386_s21 + $0x68] sm:$0xff]  ;;  %v3440_v14 = vld [vmem:[%s3386_s21 + $0x60] sm:$0xff]  ;;  %v3443_v15 = vld [vmem:[%s3386_s21 + $0x70] sm:$0xff]  ;;  %386 = vmatpush.bf16.msra.mxu0 %v3477_v19 }
  0x13   : > { %v3456_v17 = vld [vmem:[%s3386_s21 + $0x78] sm:$0xff] }
  0x15   : > { %576 = vmatpush.bf16.msra.mxu1 %v3484_v20 }
  0x16   : > { %387 = vmatpush.bf16.msra.mxu0 %v3484_v20 }
  0x17   : > { %452 = vperm.xlu1 %3179, %v3401_v4   ;;  %446 = vperm.xlu0 %3178, %v3404_v5  }
  0x18   : > { %458 = vperm.xlu2 %3180, %v3407_v6  }
  0x19   : > { %577 = vmatpush.bf16.msra.mxu1 %v3492_v21 }
  0x1a   : > { %388 = vmatpush.bf16.msra.mxu0 %v3492_v21 }
  0x1e   : > { %1224 = vmatpush.bf16.msrb.mxu0 %v3450_v16 }
  0x1f   : > { %464 = vperm.xlu1 %3179, %v3413_v7   ;;  %461 = vperm.xlu0 %3178, %v3416_v8  }
  0x20   : > { %467 = vperm.xlu2 %3180, %v3419_v9  }
  0x22   : > { %1225 = vmatpush.bf16.msrb.mxu0 %v3477_v19 }
  0x26   : > { %1226 = vmatpush.bf16.msrb.mxu0 %v3484_v20 }
  0x27   : > { %473 = vperm.xlu1 %3179, %v3425_v10   ;;  %470 = vperm.xlu0 %3178, %v3428_v11  }
  0x28   : > { %476 = vperm.xlu2 %3180, %v3431_v12  }
  0x2a   : > { %1227 = vmatpush.bf16.msrb.mxu0 %v3492_v21 }
  0x2f   : > { %482 = vperm.xlu1 %3179, %v3437_v13   ;;  %479 = vperm.xlu0 %3178, %v3440_v14  }
  0x30   : > { %485 = vperm.xlu2 %3180, %v3443_v15  }
  0x37   : > { %3181 = vset.pattern.permute.xlu1 %v3337_v18  ;;  %488 = vperm.xlu0 %3178, %v3456_v17  }
  0x38   : > { %229 = vperm.xlu1 %3181, %v3392_v2   ;;  %3182 = vset.pattern.permute.xlu2 %v3337_v18 }
  0x39   : > { %232 = vperm.xlu2 %3182, %v3404_v5  }
  0x3f   : > { %3183 = vset.pattern.permute.xlu0 %v3337_v18 }
  0x40   : > { %238 = vperm.xlu1 %3181, %v3401_v4   ;;  %235 = vperm.xlu0 %3183, %v3389_v1  }
  0x41   : > { %241 = vperm.xlu2 %3182, %v3397_v3  }
  0x48   : > { %244 = vperm.xlu1 %3181, %v3407_v6   ;;  %250 = vperm.xlu0 %3183, %v3413_v7  }
  0x49   : > { %247 = vperm.xlu2 %3182, %v3416_v8  }
  0x50   : > { %253 = vperm.xlu1 %3181, %v3419_v9   ;;  %259 = vperm.xlu0 %3183, %v3425_v10  }
  0x51   : > { %256 = vperm.xlu2 %3182, %v3428_v11  }
  0x58   : > { %262 = vperm.xlu1 %3181, %v3431_v12   ;;  %268 = vperm.xlu0 %3183, %v3437_v13  }
  0x59   : > { %265 = vperm.xlu2 %3182, %v3440_v14  }
  0x60   : > { %271 = vperm.xlu1 %3181, %v3443_v15  }
  0x61   : > { %274 = vperm.xlu2 %3182, %v3456_v17  }
  0x6a   : > { %v456_v22 = vpop.permute.xlu2 %455 }
  0x6b   : > { %vm494_vm5 = vcmp.eq.s32.totalorder %v456_v22, %v3500_v27 }
  0x6c   : > { %v2847_v47 = vsel %vm494_vm5, 1.0, %v3338_v31 }
  0x72   : > { %v459_v23 = vpop.permute.xlu2 %458 }
  0x73   : > { %vm495_vm6 = vcmp.eq.s32.totalorder %v459_v23, %v3500_v27 }
  0x74   : > { %v2848_v48 = vsel %vm495_vm6, 1.0, %v3338_v31 }
  0x75   : > { %v540_v52 = vpack.c.bf16 %v2848_v48, %v2847_v47  ;;  %v3148_v48 = vld [vmem:[%s4688_s2 + $0x18] sm:$0xff] }
  0x76   : > { %674 = vmatpush.bf16.msra.mxu2 %v3148_v48 }
  0x7a   : > { %v3502_v28 = vpop.permute.xlu2 %467 }
  0x7b   : > { %vm498_vm15 = vcmp.eq.s32.totalorder %v3502_v28, %v3500_v27 }
  0x7c   : > { %v2851_v23 = vsel %vm498_vm15, 1.0, %v3338_v31 }
  0x81   : > { %v450_v25 = vpop.permute.xlu1 %449  ;;  %v444_v26 = vpop.permute.xlu0 %443 }
  0x82   : > { %vm490_vm0 = vcmp.eq.s32.totalorder %v444_v26, %v3500_v27  ;;  %v3509_v35 = vpop.permute.xlu2 %476  ;;  %vm492_vm3 = vcmp.eq.s32.totalorder %v450_v25, %v3500_v27 }
  0x83   : > { %v2843_v32 = vsel %vm490_vm0, 1.0, %v3338_v31  ;;  %v2845_v38 = vsel %vm492_vm3, 1.0, %v3338_v31 }
  0x89   : > { %v453_v29 = vpop.permute.xlu1 %452  ;;  %v447_v30 = vpop.permute.xlu0 %446 }
  0x8a   : > { %vm491_vm1 = vcmp.eq.s32.totalorder %v447_v30, %v3500_v27  ;;  %vm493_vm4 = vcmp.eq.s32.totalorder %v453_v29, %v3500_v27  ;;  %v3517_v42 = vpop.permute.xlu2 %485 }
  0x8b   : > { %v2844_v33 = vsel %vm491_vm1, 1.0, %v3338_v31  ;;  %v2846_v39 = vsel %vm493_vm4, 1.0, %v3338_v31  ;;  %vm501_vm4 = vcmp.eq.s32.totalorder %v3509_v35, %v3500_v27 }
  0x8c   : > { %v538_v34 = vpack.c.bf16 %v2844_v33, %v2843_v32  ;;  %v539_v43 = vpack.c.bf16 %v2846_v39, %v2845_v38  ;;  %v2854_v33 = vsel %vm501_vm4, 1.0, %v3338_v31  ;;  %v3339_v38 = vmov 2  }
  0x8d   : > { %3185 = vset.pattern.permute.xlu1 %v3339_v38  ;;  %3184 = vset.pattern.permute.xlu0 %v3339_v38 }
  0x8e   : > { %2859 = vmatmul.msk.bf16.vlgmr.msra.gmra.mxu1 %vm356_vm2, %v538_v34  ;;  %806 = vperm.xlu1 %3185, %v3404_v5  }
  0x8f   : > { %803 = vperm.xlu0 %3184, %v3392_v2  }
  0x91   : > { %v465_v36 = vpop.permute.xlu1 %464  ;;  %v462_v37 = vpop.permute.xlu0 %461 }
  0x92   : > { %vm497_vm11 = vcmp.eq.s32.totalorder %v465_v36, %v3500_v27  ;;  %vm496_vm12 = vcmp.eq.s32.totalorder %v462_v37, %v3500_v27 }
  0x93   : > { %v233_v46 = vpop.permute.xlu2 %232  ;;  %v2850_v59 = vsel %vm497_vm11, 1.0, %v3338_v31  ;;  %v2849_v60 = vsel %vm496_vm12, 1.0, %v3338_v31 }
  0x94   : > { %vm277_vm7 = vcmp.eq.s32.totalorder %v233_v46, %v3500_v27  ;;  %v541_v62 = vpack.c.bf16 %v2850_v59, %v2849_v60 }
  0x95   : > { %v2804_v50 = vsel %vm277_vm7, 1.0, %v3338_v31 }
  0x97   : > { %812 = vperm.xlu0 %3184, %v3401_v4  }
  0x99   : > { %v3515_v40 = vpop.permute.xlu1 %473  ;;  %v471_v41 = vpop.permute.xlu0 %470 }
  0x9a   : > { %vm499_vm0 = vcmp.eq.s32.totalorder %v471_v41, %v3500_v27  ;;  %vm500_vm5 = vcmp.eq.s32.totalorder %v3515_v40, %v3500_v27 }
  0x9b   : > { %v242_v63 = vpop.permute.xlu2 %241  ;;  %v2852_v24 = vsel %vm499_vm0, 1.0, %v3338_v31  ;;  %v2853_v34 = vsel %vm500_vm5, 1.0, %v3338_v31  ;;  %vm643_vm0 = vcmask 261120  }
  0x9c   : > { %vm280_vm13 = vcmp.eq.s32.totalorder %v242_v63, %v3500_v27  ;;  %v542_v26 = vpack.c.bf16 %v2852_v24, %v2851_v23  ;;  %v543_v37 = vpack.c.bf16 %v2854_v33, %v2853_v34  ;;  %v3146_v63 = vld [vmem:[%s4688_s2 + $0x8] sm:$0xff] }
  0x9d   : > { %v2807_v18 = vsel %vm280_vm13, 1.0, %v3338_v31  ;;  %vm504_vm13 = vcmp.eq.s32.totalorder %v3517_v42, %v3500_v27  ;;  %759 = vmatpush.bf16.msra.mxu3 %v3146_v63 }
  0x9e   : > { %2860 = vmatmul.msk.bf16.gmra.mxu1 %vm356_vm2, %v539_v43 }
  0x9f   : > { %815 = vperm.xlu0 %3184, %v3397_v3  }
  0xa1   : > { %v3520_v44 = vpop.permute.xlu1 %482  ;;  %v3522_v45 = vpop.permute.xlu0 %479 }
  0xa3   : > { %v248_v29 = vpop.permute.xlu2 %247 }
  0xa4   : > { %vm282_vm1 = vcmp.eq.s32.totalorder %v248_v29, %v3500_v27 }
  0xa5   : > { %v2809_v28 = vsel %vm282_vm1, 1.0, %v3338_v31 }
  0xa9   : > { %v3529_v49 = vpop.permute.xlu0 %488 }
  0xaa   : > { %v230_v51 = vpop.permute.xlu1 %229  ;;  %vm505_vm12 = vcmp.eq.s32.totalorder %v3529_v49, %v3500_v27  ;;  %v2857_v49 = vsel %vm504_vm13, 1.0, %v3338_v31 }
  0xab   : > { %vm276_vm8 = vcmp.eq.s32.totalorder %v230_v51, %v3500_v27  ;;  %v257_v35 = vpop.permute.xlu2 %256 }
  0xac   : > { %v2803_v53 = vsel %vm276_vm8, 1.0, %v3338_v31  ;;  %vm285_vm6 = vcmp.eq.s32.totalorder %v257_v35, %v3500_v27  ;;  %vm503_vm8 = vcmp.eq.s32.totalorder %v3520_v44, %v3500_v27  ;;  %v3340_v44 = vmov 3  }
  0xad   : > { %v324_v54 = vpack.c.bf16 %v2804_v50, %v2803_v53  ;;  %v2812_v40 = vsel %vm285_vm6, 1.0, %v3338_v31  ;;  %v2856_v43 = vsel %vm503_vm8, 1.0, %v3338_v31  ;;  %3187 = vset.pattern.permute.xlu1 %v3340_v44  ;;  %3186 = vset.pattern.permute.xlu2 %v3340_v44 }
  0xae   : > { %2861 = vmatmul.msk.bf16.gmra.mxu1 %vm356_vm2, %v540_v52  ;;  %1096 = vperm.xlu1 %3187, %v3404_v5  }
  0xaf   : > { %2835 = vmatmul.msk.bf16.vlgmr.msra.gmra.mxu0 %vm356_vm2, %v324_v54  ;;  %1093 = vperm.xlu2 %3186, %v3392_v2  }
  0xb0   : > { %1804 = vmatpush.bf16.msra.mxu0 %v3450_v16  ;;  %3191 = vset.pattern.permute.xlu0 %v3340_v44 }
  0xb1   : > { %1108 = vperm.xlu0 %3191, %v3407_v6  }
  0xb2   : > { %v239_v55 = vpop.permute.xlu1 %238  ;;  %v236_v56 = vpop.permute.xlu0 %235 }
  0xb3   : > { %vm279_vm9 = vcmp.eq.s32.totalorder %v239_v55, %v3500_v27  ;;  %vm278_vm10 = vcmp.eq.s32.totalorder %v236_v56, %v3500_v27  ;;  %v2858_v55 = vsel %vm505_vm12, 1.0, %v3338_v31  ;;  %v266_v42 = vpop.permute.xlu2 %265 }
  0xb4   : > { %1805 = vmatpush.bf16.msra.mxu0 %v3477_v19  ;;  %v2806_v57 = vsel %vm279_vm9, 1.0, %v3338_v31  ;;  %v2805_v58 = vsel %vm278_vm10, 1.0, %v3338_v31  ;;  %vm502_vm9 = vcmp.eq.s32.totalorder %v3522_v45, %v3500_v27  ;;  %v3147_v45 = vld [vmem:[%s4688_s2 + $0x10] sm:$0xff] }
  0xb5   : > { %v325_v61 = vpack.c.bf16 %v2806_v57, %v2805_v58  ;;  %v2855_v46 = vsel %vm502_vm9, 1.0, %v3338_v31  ;;  %675 = vmatpush.bf16.msra.mxu2 %v3147_v45  ;;  %v545_v57 = vpack.c.bf16 %v2858_v55, %v2857_v49 }
  0xb6   : > { %v544_v50 = vpack.c.bf16 %v2856_v43, %v2855_v46  ;;  %1099 = vperm.xlu1 %3187, %v3389_v1  }
  0xb7   : > { %3188 = vset.pattern.permute.xlu2 %v3339_v38 }
  0xb8   : > { %1806 = vmatpush.bf16.msra.mxu0 %v3484_v20  ;;  %809 = vperm.xlu2 %3188, %v3389_v1  }
  0xb9   : > { %934 = vmatpush.bf16.msrb.mxu2 %v3450_v16  ;;  %3195 = vset.pattern.permute.xlu0 %v3339_v38 }
  0xba   : > { %v245_v0 = vpop.permute.xlu1 %244  ;;  %v251_v30 = vpop.permute.xlu0 %250  ;;  %827 = vperm.xlu0 %3195, %v3419_v9  }
  0xbb   : > { %vm281_vm14 = vcmp.eq.s32.totalorder %v245_v0, %v3500_v27  ;;  %vm283_vm3 = vcmp.eq.s32.totalorder %v251_v30, %v3500_v27  ;;  %v3145_v0 = vld [vmem:[%s4688_s2] sm:$0xff]  ;;  %v275_v23 = vpop.permute.xlu2 %274 }
  0xbc   : > { %1807 = vmatpush.bf16.msra.mxu0 %v3492_v21  ;;  %v2808_v22 = vsel %vm281_vm14, 1.0, %v3338_v31  ;;  %v2810_v32 = vsel %vm283_vm3, 1.0, %v3338_v31  ;;  %vm288_vm14 = vcmp.eq.s32.totalorder %v266_v42, %v3500_v27  ;;  %760 = vmatpush.bf16.msra.mxu3 %v3145_v0  ;;  %vm291_vm1 = vcmp.eq.s32.totalorder %v275_v23, %v3500_v27 }
  0xbd   : > { %v326_v25 = vpack.c.bf16 %v2808_v22, %v2807_v18  ;;  %v327_v36 = vpack.c.bf16 %v2810_v32, %v2809_v28  ;;  %935 = vmatpush.bf16.msrb.mxu2 %v3477_v19  ;;  %v2815_v59 = vsel %vm288_vm14, 1.0, %v3338_v31 }
  0xbe   : > { %2862 = vmatmul.msk.bf16.gmra.mxu1 %vm356_vm2, %v541_v62  ;;  %3190 = vset.pattern.permute.xlu1 %v3339_v38 }
  0xbf   : > { %2836 = vmatmul.msk.bf16.gmra.mxu0 %vm356_vm2, %v325_v61  ;;  %818 = vperm.xlu1 %3190, %v3407_v6  }
  0xc0   : > { %3189 = vset.pattern.permute.xlu2 %v3340_v44 }
  0xc1   : > { %936 = vmatpush.bf16.msrb.mxu2 %v3484_v20  ;;  %1102 = vperm.xlu2 %3189, %v3401_v4  }
  0xc2   : > { %v254_v39 = vpop.permute.xlu1 %253  ;;  %v260_v52 = vpop.permute.xlu0 %259  ;;  %836 = vperm.xlu0 %3195, %v3431_v12  }
  0xc3   : > { %vm284_vm7 = vcmp.eq.s32.totalorder %v254_v39, %v3500_v27  ;;  %vm286_vm11 = vcmp.eq.s32.totalorder %v260_v52, %v3500_v27 }
  0xc4   : > { %v2811_v41 = vsel %vm284_vm7, 1.0, %v3338_v31  ;;  %v2813_v54 = vsel %vm286_vm11, 1.0, %v3338_v31 }
  0xc5   : > { %v328_v47 = vpack.c.bf16 %v2812_v40, %v2811_v41  ;;  %937 = vmatpush.bf16.msrb.mxu2 %v3492_v21 }
  0xc7   : > { %821 = vperm.xlu1 %3190, %v3416_v8  }
  0xc9   : > { %1105 = vperm.xlu2 %3189, %v3397_v3  }
  0xca   : > { %v263_v51 = vpop.permute.xlu1 %262  ;;  %v269_v58 = vpop.permute.xlu0 %268  ;;  %839 = vperm.xlu0 %3195, %v3440_v14  }
  0xcb   : > { %vm287_vm10 = vcmp.eq.s32.totalorder %v263_v51, %v3500_v27  ;;  %vm289_vm15 = vcmp.eq.s32.totalorder %v269_v58, %v3500_v27 }
  0xcc   : > { %v2814_v53 = vsel %vm287_vm10, 1.0, %v3338_v31  ;;  %v2816_v60 = vsel %vm289_vm15, 1.0, %v3338_v31 }
  0xcd   : > { %v329_v56 = vpack.c.bf16 %v2814_v53, %v2813_v54  ;;  %v330_v61 = vpack.c.bf16 %v2816_v60, %v2815_v59 }
  0xce   : > { %2863 = vmatmul.msk.bf16.gmra.mxu1 %vm356_vm2, %v542_v26 }
  0xcf   : > { %2837 = vmatmul.msk.bf16.gmra.mxu0 %vm356_vm2, %v326_v25  ;;  %3193 = vset.pattern.permute.xlu1 %v3340_v44  ;;  %v2818_v25 = vsel %vm291_vm1, 1.0, %v3338_v31 }
  0xd0   : > { %1111 = vperm.xlu1 %3193, %v3416_v8  }
  0xd1   : > { %3192 = vset.pattern.permute.xlu2 %v3339_v38 }
  0xd2   : > { %824 = vperm.xlu2 %3192, %v3413_v7   ;;  %v272_v24 = vpop.permute.xlu1 %271  ;;  %3201 = vset.pattern.permute.xlu0 %v3340_v44 }
  0xd3   : > { %vm290_vm3 = vcmp.eq.s32.totalorder %v272_v24, %v3500_v27  ;;  %1132 = vperm.xlu0 %3201, %v3437_v13  }
  0xd4   : > { %v2817_v26 = vsel %vm290_vm3, 1.0, %v3338_v31 }
  0xd5   : > { %v331_v30 = vpack.c.bf16 %v2818_v25, %v2817_v26 }
  0xd8   : > { %3196 = vset.pattern.permute.xlu1 %v3339_v38 }
  0xd9   : > { %830 = vperm.xlu1 %3196, %v3428_v11  }
  0xda   : > { %3194 = vset.pattern.permute.xlu2 %v3340_v44 }
  0xdb   : > { %1114 = vperm.xlu2 %3194, %v3413_v7  }
  0xde   : > { %2864 = vmatmul.msk.bf16.gmra.mxu1 %vm356_vm2, %v543_v37 }
  0xdf   : > { %2838 = vmatmul.msk.bf16.gmra.mxu0 %vm356_vm2, %v327_v36 }
  0xe1   : > { %3197 = vset.pattern.permute.xlu1 %v3340_v44 }
  0xe2   : > { %1120 = vperm.xlu1 %3197, %v3428_v11  }
  0xe3   : > { %1117 = vperm.xlu2 %3194, %v3419_v9  }
  0xea   : > { %1123 = vperm.xlu1 %3197, %v3425_v10  }
  0xeb   : > { %3198 = vset.pattern.permute.xlu2 %v3339_v38 }
  0xec   : > { %833 = vperm.xlu2 %3198, %v3425_v10  }
  0xee   : > { %2865 = vmatmul.msk.bf16.gmra.mxu1 %vm356_vm2, %v544_v50 }
  0xef   : > { %2839 = vmatmul.msk.bf16.gmra.mxu0 %vm356_vm2, %v328_v47 }
  0xf2   : > { %3200 = vset.pattern.permute.xlu1 %v3339_v38 }
  0xf3   : > { %842 = vperm.xlu1 %3200, %v3437_v13  }
  0xf4   : > { %3199 = vset.pattern.permute.xlu2 %v3340_v44 }
  0xf5   : > { %1126 = vperm.xlu2 %3199, %v3431_v12  }
  0xfb   : > { %845 = vperm.xlu1 %3200, %v3443_v15  }
  0xfd   : > { %1129 = vperm.xlu2 %3199, %v3440_v14  }
  0xfe   : > { %2866 = vmatmul.msk.bf16.gmra.mxu1 %vm356_vm2, %v545_v57  ;;  %v3341_v57 = vmov 4  }
  0xff   : > { %2840 = vmatmul.msk.bf16.gmra.mxu0 %vm356_vm2, %v329_v56  ;;  %3205 = vset.pattern.permute.xlu0 %v3341_v57 }
 0x100   : > { %1383 = vperm.xlu0 %3205, %v3392_v2  }
 0x101   : > { %v3698_v59 = vpop.permute.xlu0 %803 }
 0x102   : > { %vm850_vm11 = vcmp.eq.s32.totalorder %v3698_v59, %v3500_v27 }
 0x103   : > { %3203 = vset.pattern.permute.xlu1 %v3340_v44 }
 0x104   : > { %1135 = vperm.xlu1 %3203, %v3443_v15  }
 0x105   : > { %3202 = vset.pattern.permute.xlu2 %v3339_v38  ;;  %v3687_v38 = vpop.permute.xlu1 %806 }
 0x106   : > { %848 = vperm.xlu2 %3202, %v3456_v17   ;;  %vm851_vm10 = vcmp.eq.s32.totalorder %v3687_v38, %v3500_v27 }
 0x108   : > { %1392 = vperm.xlu0 %3205, %v3401_v4  }
 0x109   : > { %v1094_v56 = vpop.permute.xlu2 %1093  ;;  %v3713_v25 = vpop.permute.xlu0 %812 }
 0x10a   : > { %vm1140_vm4 = vcmp.eq.s32.totalorder %v1094_v56, %v3500_v27  ;;  %vm853_vm1 = vcmp.eq.s32.totalorder %v3713_v25, %v3500_v27 }
 0x10b   : > { %v579_v62 = vpop.f32.mrf.mxu1 }
 0x10c   : > { %3206 = vset.pattern.permute.xlu1 %v3341_v57 }
 0x10d   : > { %1386 = vperm.xlu1 %3206, %v3404_v5  }
 0x10e   : > { %3204 = vset.pattern.permute.xlu2 %v3340_v44  ;;  %v2939_v44 = vsel %vm1140_vm4, 1.0, %v3338_v31 }
 0x10f   : > { %2841 = vmatmul.msk.bf16.gmra.mxu0 %vm356_vm2, %v330_v61  ;;  %1138 = vperm.xlu2 %3204, %v3456_v17  }
 0x110   : > { %1395 = vperm.xlu0 %3205, %v3397_v3  }
 0x113   : > { %v581_v18 = vpop.f32.mrf.mxu1 }
 0x114   : > { %v623_v22 = vpack.c.bf16 %v581_v18, %v579_v62  ;;  %v3703_v18 = vpop.permute.xlu2 %809 }
 0x115   : > { %vm852_vm15 = vcmp.eq.s32.totalorder %v3703_v18, %v3500_v27 }
 0x116   : > { %2875 = vmatmul.msk.bf16.vlgmr.msra.gmra.mxu2 %vm643_vm0, %v623_v22  ;;  %v3342_v22 = vmov 5  }
 0x117   : > { %1514 = vmatpush.bf16.msra.mxu2 %v3450_v16  ;;  %3208 = vset.pattern.permute.xlu1 %v3342_v22 }
 0x118   : > { %3207 = vset.pattern.permute.xlu2 %v3342_v22  ;;  %1676 = vperm.xlu1 %3208, %v3404_v5  }
 0x119   : > { %1673 = vperm.xlu2 %3207, %v3392_v2   ;;  %3212 = vset.pattern.permute.xlu0 %v3342_v22 }
 0x11a   : > { %1688 = vperm.xlu0 %3212, %v3407_v6  }
 0x11b   : > { %v584_v29 = vpop.f32.mrf.mxu1  ;;  %1515 = vmatpush.bf16.msra.mxu2 %v3477_v19 }
 0x11f   : > { %2842 = vmatmul.msk.bf16.gmra.mxu0 %vm356_vm2, %v331_v30  ;;  %1516 = vmatpush.bf16.msra.mxu2 %v3484_v20  ;;  %v1103_v30 = vpop.permute.xlu2 %1102 }
 0x120   : > { %v1097_v42 = vpop.permute.xlu1 %1096  ;;  %vm1143_vm7 = vcmp.eq.s32.totalorder %v1103_v30, %v3500_v27  ;;  %1679 = vperm.xlu1 %3208, %v3389_v1  }
 0x121   : > { %vm1141_vm5 = vcmp.eq.s32.totalorder %v1097_v42, %v3500_v27  ;;  %v2942_v2 = vsel %vm1143_vm7, 1.0, %v3338_v31  ;;  %3209 = vset.pattern.permute.xlu2 %v3341_v57 }
 0x122   : > { %v2940_v58 = vsel %vm1141_vm5, 1.0, %v3338_v31  ;;  %1389 = vperm.xlu2 %3209, %v3389_v1   ;;  %3216 = vset.pattern.permute.xlu0 %v3341_v57 }
 0x123   : > { %v586_v28 = vpop.f32.mrf.mxu1  ;;  %1517 = vmatpush.bf16.msra.mxu2 %v3492_v21  ;;  %v1188_v60 = vpack.c.bf16 %v2940_v58, %v2939_v44  ;;  %1407 = vperm.xlu0 %3216, %v3419_v9  }
 0x124   : > { %v624_v32 = vpack.c.bf16 %v586_v28, %v584_v29 }
 0x126   : > { %2876 = vmatmul.msk.bf16.gmra.mxu2 %vm643_vm0, %v624_v32 }
 0x128   : > { %v1100_v23 = vpop.permute.xlu1 %1099  ;;  %3211 = vset.pattern.permute.xlu1 %v3341_v57 }
 0x129   : > { %vm1142_vm6 = vcmp.eq.s32.totalorder %v1100_v23, %v3500_v27  ;;  %1398 = vperm.xlu1 %3211, %v3407_v6  }
 0x12a   : > { %v2941_v29 = vsel %vm1142_vm6, 1.0, %v3338_v31  ;;  %3210 = vset.pattern.permute.xlu2 %v3342_v22 }
 0x12b   : > { %v589_v33 = vpop.f32.mrf.mxu1  ;;  %v1189_v5 = vpack.c.bf16 %v2942_v2, %v2941_v29  ;;  %1682 = vperm.xlu2 %3210, %v3401_v4   ;;  %1416 = vperm.xlu0 %3216, %v3431_v12  }
 0x12c   : > { %v390_v34 = vpop.f32.mrf.mxu0 }
 0x12f   : > { %2955 = vmatmul.msk.bf16.vlgmr.msrb.gmra.mxu0 %vm356_vm2, %v1188_v60 }
 0x130   : > { %2384 = vmatpush.bf16.msrb.mxu0 %v3450_v16 }
 0x131   : > { %1401 = vperm.xlu1 %3211, %v3416_v8  }
 0x133   : > { %v591_v36 = vpop.f32.mrf.mxu1  ;;  %1685 = vperm.xlu2 %3210, %v3397_v3   ;;  %v3152_v3 = vld [vmem:[%s4688_s2 + $0x38] sm:$0xff]  ;;  %1419 = vperm.xlu0 %3216, %v3440_v14  }
 0x134   : > { %v625_v37 = vpack.c.bf16 %v591_v36, %v589_v33  ;;  %v392_v35 = vpop.f32.mrf.mxu0  ;;  %2385 = vmatpush.bf16.msrb.mxu0 %v3477_v19  ;;  %v3725_v36 = vpop.permute.xlu0 %815  ;;  %1323 = vmatpush.bf16.msrb.mxu1 %v3152_v3  ;;  %v3151_v3 = vld [vmem:[%s4688_s2 + $0x30] sm:$0xff] }
 0x135   : > { %v434_v39 = vpack.c.bf16 %v392_v35, %v390_v34  ;;  %v1106_v35 = vpop.permute.xlu2 %1105  ;;  %vm854_vm6 = vcmp.eq.s32.totalorder %v3725_v36, %v3500_v27 }
 0x136   : > { %2877 = vmatmul.msk.bf16.gmra.mxu2 %vm643_vm0, %v625_v37  ;;  %vm1144_vm8 = vcmp.eq.s32.totalorder %v1106_v35, %v3500_v27 }
 0x137   : > { %2891 = vmatmul.msk.bf16.vlgmr.msra.gmra.mxu3 %vm643_vm0, %v434_v39 }
 0x138   : > { %2386 = vmatpush.bf16.msrb.mxu0 %v3484_v20  ;;  %1324 = vmatpush.bf16.msrb.mxu1 %v3151_v3 }
 0x139   : > { %3214 = vset.pattern.permute.xlu1 %v3342_v22 }
 0x13a   : > { %1691 = vperm.xlu1 %3214, %v3416_v8  }
 0x13b   : > { %v594_v40 = vpop.f32.mrf.mxu1  ;;  %3213 = vset.pattern.permute.xlu2 %v3341_v57  ;;  %3222 = vset.pattern.permute.xlu0 %v3342_v22 }
 0x13c   : > { %v395_v41 = vpop.f32.mrf.mxu0  ;;  %2387 = vmatpush.bf16.msrb.mxu0 %v3492_v21  ;;  %v1109_v39 = vpop.permute.xlu0 %1108  ;;  %1404 = vperm.xlu2 %3213, %v3413_v7  }
 0x13d   : > { %vm1145_vm9 = vcmp.eq.s32.totalorder %v1109_v39, %v3500_v27  ;;  %1712 = vperm.xlu0 %3222, %v3437_v13  }
 0x13f   : > { %2956 = vmatmul.msk.bf16.gmra.mxu0 %vm356_vm2, %v1189_v5 }
 0x142   : > { %3217 = vset.pattern.permute.xlu1 %v3341_v57 }
 0x143   : > { %v596_v43 = vpop.f32.mrf.mxu1  ;;  %1410 = vperm.xlu1 %3217, %v3428_v11  }
 0x144   : > { %v626_v46 = vpack.c.bf16 %v596_v43, %v594_v40  ;;  %v397_v47 = vpop.f32.mrf.mxu0  ;;  %v3736_v40 = vpop.permute.xlu1 %818  ;;  %v2944_v43 = vsel %vm1145_vm9, 1.0, %v3338_v31  ;;  %3215 = vset.pattern.permute.xlu2 %v3342_v22 }
 0x145   : > { %v435_v48 = vpack.c.bf16 %v397_v47, %v395_v41  ;;  %v2943_v41 = vsel %vm1144_vm8, 1.0, %v3338_v31  ;;  %1694 = vperm.xlu2 %3215, %v3413_v7   ;;  %v3803_v23 = vpop.permute.xlu0 %827  ;;  %vm855_vm5 = vcmp.eq.s32.totalorder %v3736_v40, %v3500_v27 }
 0x146   : > { %2878 = vmatmul.msk.bf16.gmra.mxu2 %vm643_vm0, %v626_v46  ;;  %v1190_v6 = vpack.c.bf16 %v2944_v43, %v2943_v41  ;;  %v2904_v5 = vsel %vm855_vm5, 1.0, %v3338_v31 }
 0x147   : > { %2892 = vmatmul.msk.bf16.gmra.mxu3 %vm643_vm0, %v435_v48 }
 0x14b   : > { %v599_v50 = vpop.f32.mrf.mxu1  ;;  %3218 = vset.pattern.permute.xlu1 %v3342_v22 }
 0x14c   : > { %v400_v45 = vpop.f32.mrf.mxu0  ;;  %1700 = vperm.xlu1 %3218, %v3428_v11   ;;  %v2902_v11 = vsel %vm853_vm1, 1.0, %v3338_v31 }
 0x14d   : > { %1697 = vperm.xlu2 %3215, %v3419_v9   ;;  %v3814_v29 = vpop.permute.xlu0 %836 }
 0x14f   : > { %2957 = vmatmul.msk.bf16.gmra.mxu0 %vm356_vm2, %v1190_v6 }
 0x153   : > { %v601_v51 = vpop.f32.mrf.mxu1 }
 0x154   : > { %v627_v52 = vpack.c.bf16 %v601_v51, %v599_v50  ;;  %v402_v53 = vpop.f32.mrf.mxu0  ;;  %v3150_v50 = vld [vmem:[%s4688_s2 + $0x28] sm:$0xff]  ;;  %v3752_v51 = vpop.permute.xlu1 %821  ;;  %1703 = vperm.xlu1 %3218, %v3425_v10  }
 0x155   : > { %v436_v54 = vpack.c.bf16 %v402_v53, %v400_v45  ;;  %v3750_v45 = vpop.permute.xlu2 %824  ;;  %1033 = vmatpush.bf16.msrb.mxu3 %v3150_v50  ;;  %3219 = vset.pattern.permute.xlu2 %v3341_v57 }
 0x156   : > { %2879 = vmatmul.msk.bf16.gmra.mxu2 %vm643_vm0, %v627_v52  ;;  %1413 = vperm.xlu2 %3219, %v3425_v10  }
 0x157   : > { %2893 = vmatmul.msk.bf16.gmra.mxu3 %vm643_vm0, %v436_v54 }
 0x15b   : > { %v604_v55 = vpop.f32.mrf.mxu1 }
 0x15c   : > { %v405_v49 = vpop.f32.mrf.mxu0  ;;  %v1112_v54 = vpop.permute.xlu1 %1111  ;;  %3221 = vset.pattern.permute.xlu1 %v3341_v57 }
 0x15d   : > { %v1115_v53 = vpop.permute.xlu2 %1114  ;;  %vm1146_vm13 = vcmp.eq.s32.totalorder %v1112_v54, %v3500_v27  ;;  %1422 = vperm.xlu1 %3221, %v3437_v13  }
 0x15e   : > { %vm1147_vm12 = vcmp.eq.s32.totalorder %v1115_v53, %v3500_v27  ;;  %v2945_v38 = vsel %vm1146_vm13, 1.0, %v3338_v31  ;;  %3220 = vset.pattern.permute.xlu2 %v3342_v22  ;;  %vm858_vm13 = vcmp.eq.s32.totalorder %v3803_v23, %v3500_v27 }
 0x15f   : > { %v2946_v8 = vsel %vm1147_vm12, 1.0, %v3338_v31  ;;  %1706 = vperm.xlu2 %3220, %v3431_v12   ;;  %v2907_v54 = vsel %vm858_vm13, 1.0, %v3338_v31 }
 0x160   : > { %v1191_v56 = vpack.c.bf16 %v2946_v8, %v2945_v38 }
 0x162   : > { %2958 = vmatmul.msk.bf16.gmra.mxu0 %vm356_vm2, %v1191_v56 }
 0x163   : > { %v606_v61 = vpop.f32.mrf.mxu1 }
 0x164   : > { %v628_v62 = vpack.c.bf16 %v606_v61, %v604_v55  ;;  %v407_v63 = vpop.f32.mrf.mxu0  ;;  %v2900_v55 = vsel %vm851_vm10, 1.0, %v3338_v31  ;;  %v3779_v59 = vpop.permute.xlu1 %830  ;;  %vm857_vm10 = vcmp.eq.s32.totalorder %v3750_v45, %v3500_v27 }
 0x165   : > { %v437_v0 = vpack.c.bf16 %v407_v63, %v405_v49  ;;  %v2899_v49 = vsel %vm850_vm11, 1.0, %v3338_v31  ;;  %v1118_v61 = vpop.permute.xlu2 %1117  ;;  %v2901_v63 = vsel %vm852_vm15, 1.0, %v3338_v31  ;;  %1425 = vperm.xlu1 %3221, %v3443_v15   ;;  %vm856_vm11 = vcmp.eq.s32.totalorder %v3752_v51, %v3500_v27 }
 0x166   : > { %2880 = vmatmul.msk.bf16.gmra.mxu2 %vm643_vm0, %v628_v62  ;;  %v898_v44 = vpack.c.bf16 %v2900_v55, %v2899_v49  ;;  %vm1148_vm14 = vcmp.eq.s32.totalorder %v1118_v61, %v3500_v27  ;;  %v2906_v43 = vsel %vm857_vm10, 1.0, %v3338_v31  ;;  %v2905_v6 = vsel %vm856_vm11, 1.0, %v3338_v31 }
 0x167   : > { %2894 = vmatmul.msk.bf16.gmra.mxu3 %vm643_vm0, %v437_v0  ;;  %v2947_v7 = vsel %vm1148_vm14, 1.0, %v3338_v31  ;;  %1709 = vperm.xlu2 %3220, %v3440_v14   ;;  %vm859_vm12 = vcmp.eq.s32.totalorder %v3779_v59, %v3500_v27 }
 0x16b   : > { %v609_v24 = vpop.f32.mrf.mxu1 }
 0x16c   : > { %v410_v26 = vpop.f32.mrf.mxu0 }
 0x16d   : > { %3224 = vset.pattern.permute.xlu1 %v3342_v22 }
 0x16e   : > { %1715 = vperm.xlu1 %3224, %v3443_v15  }
 0x16f   : > { %3223 = vset.pattern.permute.xlu2 %v3341_v57 }
 0x170   : > { %1428 = vperm.xlu2 %3223, %v3456_v17  }
 0x173   : > { %v611_v28 = vpop.f32.mrf.mxu1 }
 0x174   : > { %v629_v32 = vpack.c.bf16 %v611_v28, %v609_v24  ;;  %v412_v33 = vpop.f32.mrf.mxu0  ;;  %v899_v24 = vpack.c.bf16 %v2902_v11, %v2901_v63  ;;  %v2903_v28 = vsel %vm854_vm6, 1.0, %v3338_v31 }
 0x175   : > { %v438_v34 = vpack.c.bf16 %v412_v33, %v410_v26  ;;  %v900_v36 = vpack.c.bf16 %v2904_v5, %v2903_v28 }
 0x176   : > { %2881 = vmatmul.msk.bf16.gmra.mxu2 %vm643_vm0, %v629_v32 }
 0x177   : > { %2895 = vmatmul.msk.bf16.gmra.mxu3 %vm643_vm0, %v438_v34  ;;  %v3832_v34 = vpop.permute.xlu0 %839 }
 0x178   : > { %3225 = vset.pattern.permute.xlu2 %v3342_v22  ;;  %v2908_v22 = vsel %vm859_vm12, 1.0, %v3338_v31 }
 0x179   : > { %1718 = vperm.xlu2 %3225, %v3456_v17   ;;  %v902_v38 = vpack.c.bf16 %v2908_v22, %v2907_v54 }
 0x17b   : > { %v614_v1 = vpop.f32.mrf.mxu1 }
 0x17c   : > { %v415_v37 = vpop.f32.mrf.mxu0 }
 0x17f   : > { %v1133_v35 = vpop.permute.xlu0 %1132 }
 0x180   : > { %vm1153_vm9 = vcmp.eq.s32.totalorder %v1133_v35, %v3500_v27 }
 0x181   : > { %v2952_v40 = vsel %vm1153_vm9, 1.0, %v3338_v31 }
 0x183   : > { %v616_v4 = vpop.f32.mrf.mxu1 }
 0x184   : > { %v630_v46 = vpack.c.bf16 %v616_v4, %v614_v1  ;;  %v417_v47 = vpop.f32.mrf.mxu0 }
 0x185   : > { %v439_v48 = vpack.c.bf16 %v417_v47, %v415_v37  ;;  %v3149_v47 = vld [vmem:[%s4688_s2 + $0x20] sm:$0xff] }
 0x186   : > { %2882 = vmatmul.msk.bf16.gmra.mxu2 %vm643_vm0, %v630_v46  ;;  %1034 = vmatpush.bf16.msrb.mxu3 %v3149_v47 }
 0x187   : > { %2896 = vmatmul.msk.bf16.gmra.mxu3 %vm643_vm0, %v439_v48  ;;  %v901_v48 = vpack.c.bf16 %v2906_v43, %v2905_v6 }
 0x18c   : > { %v420_v52 = vpop.f32.mrf.mxu0 }
 0x194   : > { %v422_v42 = vpop.f32.mrf.mxu0 }
 0x195   : > { %v440_v58 = vpack.c.bf16 %v422_v42, %v420_v52 }
 0x196   : > { %2915 = vmatmul.msk.bf16.vlgmr.msrb.gmra.mxu2 %vm356_vm2, %v898_v44 }
 0x197   : > { %2897 = vmatmul.msk.bf16.gmra.mxu3 %vm643_vm0, %v440_v58  ;;  %2094 = vmatpush.bf16.msrb.mxu2 %v3450_v16  ;;  %v1121_v16 = vpop.permute.xlu1 %1120 }
 0x198   : > { %vm1149_vm3 = vcmp.eq.s32.totalorder %v1121_v16, %v3500_v27 }
 0x199   : > { %v677_v60 = vpop.f32.mrf.mxu2 }
 0x19b   : > { %2095 = vmatpush.bf16.msrb.mxu2 %v3477_v19  ;;  %v2948_v19 = vsel %vm1149_vm3, 1.0, %v3338_v31 }
 0x19c   : > { %v425_v62 = vpop.f32.mrf.mxu0  ;;  %v1192_v18 = vpack.c.bf16 %v2948_v19, %v2947_v7 }
 0x19e   : > { %2959 = vmatmul.msk.bf16.gmra.mxu0 %vm356_vm2, %v1192_v18 }
 0x19f   : > { %2096 = vmatpush.bf16.msrb.mxu2 %v3484_v20  ;;  %v3809_v20 = vpop.permute.xlu2 %833 }
 0x1a0   : > { %vm860_vm3 = vcmp.eq.s32.totalorder %v3809_v20, %v3500_v27  ;;  %v3312_v20 = vld [vmem:[%s3386_s21 + $0x8] sm:$0xff] }
 0x1a1   : > { %v3801_v0 = vpop.f32.mrf.mxu2  ;;  %v2909_v16 = vsel %vm860_vm3, 1.0, %v3338_v31 }
 0x1a3   : > { %2097 = vmatpush.bf16.msrb.mxu2 %v3492_v21  ;;  %v1124_v21 = vpop.permute.xlu1 %1123 }
 0x1a4   : > { %v427_v25 = vpop.f32.mrf.mxu0  ;;  %vm1150_vm4 = vcmp.eq.s32.totalorder %v1124_v21, %v3500_v27 }
 0x1a5   : > { %v441_v9 = vpack.c.bf16 %v427_v25, %v425_v62  ;;  %v2949_v30 = vsel %vm1150_vm4, 1.0, %v3338_v31  ;;  %vm861_vm4 = vcmp.eq.s32.totalorder %v3814_v29, %v3500_v27  ;;  %v3343_v25 = vmov 6  }
 0x1a6   : > { %2916 = vmatmul.msk.bf16.gmra.mxu2 %vm356_vm2, %v899_v24  ;;  %v2910_v19 = vsel %vm861_vm4, 1.0, %v3338_v31  ;;  %v3912_v24 = vpop.permute.xlu0 %1383  ;;  %3227 = vset.pattern.permute.xlu1 %v3343_v25 }
 0x1a7   : > { %2898 = vmatmul.msk.bf16.gmra.mxu3 %vm643_vm0, %v441_v9  ;;  %v1127_v2 = vpop.permute.xlu2 %1126  ;;  %3226 = vset.pattern.permute.xlu0 %v3343_v25  ;;  %v903_v9 = vpack.c.bf16 %v2910_v19, %v2909_v16  ;;  %v3154_v16 = vld [vmem:[%s4688_s2 + $0x48] sm:$0xff] }
 0x1a8   : > { %vm1151_vm7 = vcmp.eq.s32.totalorder %v1127_v2, %v3500_v27  ;;  %1966 = vperm.xlu1 %3227, %v3312_v20   ;;  %1613 = vmatpush.bf16.msra.mxu3 %v3154_v16 }
 0x1a9   : > { %v682_v26 = vpop.f32.mrf.mxu2  ;;  %v2950_v10 = vsel %vm1151_vm7, 1.0, %v3338_v31 }
 0x1aa   : > { %v1193_v33 = vpack.c.bf16 %v2950_v10, %v2949_v30 }
 0x1ab   : > { %v3848_v14 = vpop.permute.xlu1 %842 }
 0x1ac   : > { %v1229_v18 = vpop.f32.mrf.mxu0  ;;  %vm863_vm7 = vcmp.eq.s32.totalorder %v3848_v14, %v3500_v27 }
 0x1ae   : > { %2960 = vmatmul.msk.bf16.gmra.mxu0 %vm356_vm2, %v1193_v33  ;;  %v3924_v28 = vpop.permute.xlu0 %1392 }
 0x1af   : > { %v1130_v37 = vpop.permute.xlu2 %1129 }
 0x1b0   : > { %vm1152_vm8 = vcmp.eq.s32.totalorder %v1130_v37, %v3500_v27 }
 0x1b1   : > { %v3830_v32 = vpop.f32.mrf.mxu2  ;;  %v2951_v39 = vsel %vm1152_vm8, 1.0, %v3338_v31  ;;  %vm862_vm8 = vcmp.eq.s32.totalorder %v3832_v34, %v3500_v27 }
 0x1b2   : > { %v1194_v41 = vpack.c.bf16 %v2952_v40, %v2951_v39  ;;  %v2912_v39 = vsel %vm863_vm7, 1.0, %v3338_v31  ;;  %v2911_v40 = vsel %vm862_vm8, 1.0, %v3338_v31 }
 0x1b3   : > { %v3867_v57 = vpop.permute.xlu1 %845  ;;  %v904_v47 = vpack.c.bf16 %v2912_v39, %v2911_v40 }
 0x1b4   : > { %v1231_v2 = vpop.f32.mrf.mxu0  ;;  %vm864_vm13 = vcmp.eq.s32.totalorder %v3867_v57, %v3500_v27 }
 0x1b5   : > { %v1273_v5 = vpack.c.bf16 %v1231_v2, %v1229_v18  ;;  %v3318_v18 = vld [vmem:[%s3386_s21 + $0x30] sm:$0xff] }
 0x1b6   : > { %2917 = vmatmul.msk.bf16.gmra.mxu2 %vm356_vm2, %v900_v36  ;;  %v3344_v36 = vmov 7   ;;  %v3946_v6 = vpop.permute.xlu0 %1395 }
 0x1b7   : > { %v3865_v15 = vpop.permute.xlu2 %848  ;;  %3229 = vset.pattern.permute.xlu1 %v3344_v36  ;;  %2971 = vmatmul.msk.bf16.vlgmr.msrb.gmra.mxu1 %vm643_vm0, %v1273_v5  ;;  %v3156_v5 = vld [vmem:[%s4688_s2 + $0x58] sm:$0xff] }
 0x1b8   : > { %2256 = vperm.xlu1 %3229, %v3312_v20   ;;  %3228 = vset.pattern.permute.xlu2 %v3344_v36  ;;  %vm865_vm12 = vcmp.eq.s32.totalorder %v3865_v15, %v3500_v27 }
 0x1b9   : > { %v687_v13 = vpop.f32.mrf.mxu2  ;;  %1903 = vmatpush.bf16.msra.mxu1 %v3156_v5 }
 0x1ba   : > { %v762_v12 = vpop.f32.mrf.mxu3 }
 0x1bb   : > { %v3838_v1 = vadd.f32 %v762_v12, %v677_v60  ;;  %v1136_v53 = vpop.permute.xlu1 %1135 }
 0x1bc   : > { %vm1154_vm15 = vcmp.eq.s32.totalorder %v1136_v53, %v3500_v27  ;;  %v1234_v34 = vpop.f32.mrf.mxu0 }
 0x1bd   : > { %v2953_v55 = vsel %vm1154_vm15, 1.0, %v3338_v31  ;;  %vm1430_vm15 = vcmp.eq.s32.totalorder %v3912_v24, %v3500_v27 }
 0x1be   : > { %2961 = vmatmul.msk.bf16.gmra.mxu0 %vm356_vm2, %v1194_v41 }
 0x1bf   : > { %v1139_v52 = vpop.permute.xlu2 %1138 }
 0x1c0   : > { %vm1155_vm14 = vcmp.eq.s32.totalorder %v1139_v52, %v3500_v27 }
 0x1c1   : > { %v3855_v4 = vpop.f32.mrf.mxu2  ;;  %v2954_v17 = vsel %vm1155_vm14, 1.0, %v3338_v31 }
 0x1c2   : > { %v3858_v46 = vpop.f32.mrf.mxu3  ;;  %v1195_v8 = vpack.c.bf16 %v2954_v17, %v2953_v55  ;;  %v1689_v17 = vpop.permute.xlu0 %1688 }
 0x1c3   : > { %v3892_v44 = vpop.permute.xlu1 %1386  ;;  %vm1725_vm11 = vcmp.eq.s32.totalorder %v1689_v17, %v3500_v27 }
 0x1c4   : > { %v1236_v3 = vpop.f32.mrf.mxu0  ;;  %vm1431_vm14 = vcmp.eq.s32.totalorder %v3892_v44, %v3500_v27 }
 0x1c5   : > { %v1274_v53 = vpack.c.bf16 %v1236_v3, %v1234_v34  ;;  %v4030_v3 = vld [vmem:[%s3386_s21 + $0x60] sm:$0xff] }
 0x1c6   : > { %2918 = vmatmul.msk.bf16.gmra.mxu2 %vm356_vm2, %v901_v48  ;;  %v3315_v48 = vld [vmem:[%s3386_s21 + $0x10] sm:$0xff] }
 0x1c7   : > { %v1674_v60 = vpop.permute.xlu2 %1673  ;;  %2259 = vperm.xlu1 %3229, %v3315_v48   ;;  %2972 = vmatmul.msk.bf16.gmra.mxu1 %vm643_vm0, %v1274_v53 }
 0x1c8   : > { %vm1720_vm1 = vcmp.eq.s32.totalorder %v1674_v60, %v3500_v27  ;;  %v2914_v60 = vsel %vm865_vm12, 1.0, %v3338_v31 }
 0x1c9   : > { %v692_v50 = vpop.f32.mrf.mxu2  ;;  %v3019_v61 = vsel %vm1720_vm1, 1.0, %v3338_v31 }
 0x1ca   : > { %v767_v45 = vpop.f32.mrf.mxu3 }
 0x1cb   : > { %v3871_v51 = vadd.f32 %v767_v45, %v682_v26  ;;  %v1677_v62 = vpop.permute.xlu1 %1676  ;;  %v3313_v26 = vld [vmem:[%s3386_s21] sm:$0xff] }
 0x1cc   : > { %vm1721_vm5 = vcmp.eq.s32.totalorder %v1677_v62, %v3500_v27  ;;  %1963 = vperm.xlu0 %3226, %v3313_v26   ;;  %2253 = vperm.xlu2 %3228, %v3313_v26   ;;  %v1239_v15 = vpop.f32.mrf.mxu0 }
 0x1cd   : > { %v3020_v7 = vsel %vm1721_vm5, 1.0, %v3338_v31 }
 0x1ce   : > { %2962 = vmatmul.msk.bf16.gmra.mxu0 %vm356_vm2, %v1195_v8  ;;  %v1768_v11 = vpack.c.bf16 %v3020_v7, %v3019_v61  ;;  %v3024_v8 = vsel %vm1725_vm11, 1.0, %v3338_v31  ;;  %v2913_v61 = vsel %vm864_vm13, 1.0, %v3338_v31 }
 0x1cf   : > { %v3920_v29 = vpop.permute.xlu2 %1389  ;;  %3232 = vset.pattern.permute.xlu1 %v3343_v25  ;;  %v905_v57 = vpack.c.bf16 %v2914_v60, %v2913_v61 }
 0x1d0   : > { %vm1432_vm5 = vcmp.eq.s32.totalorder %v3920_v29, %v3500_v27  ;;  %v3324_v29 = vld [vmem:[%s3386_s21 + $0x68] sm:$0xff] }
 0x1d1   : > { %v3886_v49 = vpop.f32.mrf.mxu2  ;;  %v2981_v61 = vsel %vm1432_vm5, 1.0, %v3338_v31 }
 0x1d2   : > { %v3888_v56 = vpop.f32.mrf.mxu3 }
 0x1d3   : > { %v1680_v21 = vpop.permute.xlu1 %1679 }
 0x1d4   : > { %vm1722_vm6 = vcmp.eq.s32.totalorder %v1680_v21, %v3500_v27  ;;  %3230 = vset.pattern.permute.xlu2 %v3343_v25  ;;  %v1241_v26 = vpop.f32.mrf.mxu0 }
 0x1d5   : > { %v3021_v12 = vsel %vm1722_vm6, 1.0, %v3338_v31  ;;  %1969 = vperm.xlu2 %3230, %v3315_v48   ;;  %v1275_v2 = vpack.c.bf16 %v1241_v26, %v1239_v15  ;;  %v3321_v48 = vld [vmem:[%s3386_s21 + $0x38] sm:$0xff]  ;;  %vm1433_vm6 = vcmp.eq.s32.totalorder %v3924_v28, %v3500_v27 }
 0x1d6   : > { %2919 = vmatmul.msk.bf16.gmra.mxu2 %vm356_vm2, %v902_v38  ;;  %v2982_v15 = vsel %vm1433_vm6, 1.0, %v3338_v31 }
 0x1d7   : > { %v1683_v37 = vpop.permute.xlu2 %1682  ;;  %2973 = vmatmul.msk.bf16.gmra.mxu1 %vm643_vm0, %v1275_v2  ;;  %v1479_v2 = vpack.c.bf16 %v2982_v15, %v2981_v61  ;;  %v3326_v15 = vld [vmem:[%s3386_s21 + $0x70] sm:$0xff] }
 0x1d8   : > { %vm1723_vm9 = vcmp.eq.s32.totalorder %v1683_v37, %v3500_v27  ;;  %v2980_v37 = vsel %vm1431_vm14, 1.0, %v3338_v31 }
 0x1d9   : > { %v3894_v42 = vpop.f32.mrf.mxu2  ;;  %v3022_v35 = vsel %vm1723_vm9, 1.0, %v3338_v31 }
 0x1da   : > { %v772_v58 = vpop.f32.mrf.mxu3  ;;  %v1769_v41 = vpack.c.bf16 %v3022_v35, %v3021_v12  ;;  %v4015_v35 = vld [vmem:[%s3386_s21 + $0x58] sm:$0xff] }
 0x1db   : > { %v3896_v59 = vadd.f32 %v772_v58, %v687_v13  ;;  %v3314_v13 = vld [vmem:[%s3386_s21 + $0x18] sm:$0xff]  ;;  %v3969_v38 = vpop.permute.xlu1 %1398 }
 0x1dc   : > { %1972 = vperm.xlu0 %3226, %v3314_v13   ;;  %vm1435_vm9 = vcmp.eq.s32.totalorder %v3969_v38, %v3500_v27 }
 0x1dd   : > { %3231 = vset.pattern.permute.xlu2 %v3344_v36 }
 0x1de   : > { %3035 = vmatmul.msk.bf16.vlgmr.msra.gmra.mxu0 %vm356_vm2, %v1768_v11  ;;  %2262 = vperm.xlu2 %3231, %v3314_v13  }
 0x1df   : > { %v1686_v54 = vpop.permute.xlu2 %1685 }
 0x1e0   : > { %vm1724_vm10 = vcmp.eq.s32.totalorder %v1686_v54, %v3500_v27  ;;  %v3323_v54 = vld [vmem:[%s3386_s21 + $0x48] sm:$0xff] }
 0x1e1   : > { %v3908_v63 = vpop.f32.mrf.mxu2  ;;  %v3023_v55 = vsel %vm1724_vm10, 1.0, %v3338_v31  ;;  %vm1434_vm10 = vcmp.eq.s32.totalorder %v3946_v6, %v3500_v27 }
 0x1e2   : > { %v3910_v23 = vpop.f32.mrf.mxu3  ;;  %v1770_v58 = vpack.c.bf16 %v3024_v8, %v3023_v55 }
 0x1e3   : > { %v3986_v11 = vpop.permute.xlu1 %1401 }
 0x1e6   : > { %2920 = vmatmul.msk.bf16.gmra.mxu2 %vm356_vm2, %v903_v9  ;;  %v3991_v9 = vld [vmem:[%s3386_s21 + $0x40] sm:$0xff] }
 0x1e7   : > { %v3984_v19 = vpop.permute.xlu2 %1404 }
 0x1e8   : > { %vm1437_vm14 = vcmp.eq.s32.totalorder %v3984_v19, %v3500_v27  ;;  %v3153_v19 = vld [vmem:[%s4688_s2 + $0x40] sm:$0xff] }
 0x1e9   : > { %v3922_v30 = vpop.f32.mrf.mxu2  ;;  %1614 = vmatpush.bf16.msra.mxu3 %v3153_v19 }
 0x1ea   : > { %v777_v10 = vpop.f32.mrf.mxu3 }
 0x1eb   : > { %v3926_v33 = vadd.f32 %v777_v10, %v692_v50  ;;  %v3316_v50 = vld [vmem:[%s3386_s21 + $0x20] sm:$0xff]  ;;  %v1692_v12 = vpop.permute.xlu1 %1691 }
 0x1ec   : > { %1975 = vperm.xlu0 %3226, %v3316_v50   ;;  %2265 = vperm.xlu2 %3231, %v3316_v50   ;;  %vm1726_vm3 = vcmp.eq.s32.totalorder %v1692_v12, %v3500_v27 }
 0x1ed   : > { %v3025_v24 = vsel %vm1726_vm3, 1.0, %v3338_v31 }
 0x1ee   : > { %3036 = vmatmul.msk.bf16.gmra.mxu0 %vm356_vm2, %v1769_v41  ;;  %v1244_v41 = vpop.f32.mrf.mxu0 }
 0x1ef   : > { %v1695_v13 = vpop.permute.xlu2 %1694 }
 0x1f0   : > { %vm1727_vm1 = vcmp.eq.s32.totalorder %v1695_v13, %v3500_v27 }
 0x1f1   : > { %v3942_v14 = vpop.f32.mrf.mxu2  ;;  %v3026_v44 = vsel %vm1727_vm1, 1.0, %v3338_v31 }
 0x1f2   : > { %v3944_v43 = vpop.f32.mrf.mxu3  ;;  %v1771_v40 = vpack.c.bf16 %v3026_v44, %v3025_v24 }
 0x1f3   : > { %v4026_v50 = vpop.permute.xlu1 %1410 }
 0x1f4   : > { %3233 = vset.pattern.permute.xlu0 %v3344_v36  ;;  %3234 = vset.pattern.permute.xlu2 %v3343_v25  ;;  %vm1439_vm1 = vcmp.eq.s32.totalorder %v4026_v50, %v3500_v27 }
 0x1f5   : > { %1984 = vperm.xlu2 %3234, %v3321_v48  }
 0x1f6   : > { %2921 = vmatmul.msk.bf16.gmra.mxu2 %vm356_vm2, %v904_v47  ;;  %v1246_v53 = vpop.f32.mrf.mxu0 }
 0x1f7   : > { %v1276_v55 = vpack.c.bf16 %v1246_v53, %v1244_v41  ;;  %v1698_v8 = vpop.permute.xlu2 %1697 }
 0x1f8   : > { %vm1728_vm4 = vcmp.eq.s32.totalorder %v1698_v8, %v3500_v27 }
 0x1f9   : > { %v3953_v45 = vpop.f32.mrf.mxu2  ;;  %2974 = vmatmul.msk.bf16.gmra.mxu1 %vm643_vm0, %v1276_v55 }
 0x1fa   : > { %v782_v52 = vpop.f32.mrf.mxu3 }
 0x1fb   : > { %v3956_v22 = vadd.f32 %v782_v52, %v3894_v42  ;;  %v3317_v42 = vld [vmem:[%s3386_s21 + $0x28] sm:$0xff]  ;;  %v1701_v60 = vpop.permute.xlu1 %1700 }
 0x1fc   : > { %1978 = vperm.xlu1 %3232, %v3317_v42   ;;  %2268 = vperm.xlu0 %3233, %v3317_v42   ;;  %vm1729_vm7 = vcmp.eq.s32.totalorder %v1701_v60, %v3500_v27 }
 0x1fd   : > { %3236 = vset.pattern.permute.xlu2 %v3344_v36 }
 0x1fe   : > { %3037 = vmatmul.msk.bf16.gmra.mxu0 %vm356_vm2, %v1770_v58  ;;  %2274 = vperm.xlu2 %3236, %v3321_v48   ;;  %v3027_v58 = vsel %vm1728_vm4, 1.0, %v3338_v31  ;;  %v2984_v48 = vsel %vm1435_vm9, 1.0, %v3338_v31 }
 0x1ff   : > { %v4060_v5 = vpop.permute.xlu2 %1413 }
 0x201   : > { %v3975_v62 = vpop.f32.mrf.mxu2 }
 0x202   : > { %v3977_v7 = vpop.f32.mrf.mxu3 }
 0x203   : > { %v1704_v13 = vpop.permute.xlu1 %1703 }
 0x204   : > { %1981 = vperm.xlu1 %3232, %v3318_v18   ;;  %3237 = vset.pattern.permute.xlu0 %v3343_v25  ;;  %vm1730_vm8 = vcmp.eq.s32.totalorder %v1704_v13, %v3500_v27 }
 0x205   : > { %1987 = vperm.xlu0 %3237, %v3991_v9   ;;  %v3029_v41 = vsel %vm1730_vm8, 1.0, %v3338_v31 }
 0x206   : > { %2922 = vmatmul.msk.bf16.gmra.mxu2 %vm356_vm2, %v905_v57  ;;  %2277 = vperm.xlu2 %3236, %v3991_v9  }
 0x209   : > { %v3994_v20 = vpop.f32.mrf.mxu2 }
 0x20a   : > { %v787_v21 = vpop.f32.mrf.mxu3 }
 0x20b   : > { %v3997_v10 = vadd.f32 %v787_v21, %v3922_v30  ;;  %v2979_v30 = vsel %vm1430_vm15, 1.0, %v3338_v31  ;;  %v4054_v21 = vpop.permute.xlu0 %1407  ;;  %vm1436_vm15 = vcmp.eq.s32.totalorder %v3986_v11, %v3500_v27 }
 0x20c   : > { %3235 = vset.pattern.permute.xlu1 %v3344_v36  ;;  %v1478_v34 = vpack.c.bf16 %v2980_v37, %v2979_v30  ;;  %vm1438_vm3 = vcmp.eq.s32.totalorder %v4054_v21, %v3500_v27 }
 0x20d   : > { %2271 = vperm.xlu1 %3235, %v3318_v18   ;;  %1996 = vperm.xlu0 %3237, %v4015_v35  }
 0x20e   : > { %3038 = vmatmul.msk.bf16.gmra.mxu0 %vm356_vm2, %v1771_v40  ;;  %v3325_v40 = vld [vmem:[%s3386_s21 + $0x50] sm:$0xff]  ;;  %3240 = vset.pattern.permute.xlu2 %v3343_v25 }
 0x20f   : > { %1993 = vperm.xlu2 %3240, %v3325_v40  }
 0x211   : > { %v4018_v39 = vpop.f32.mrf.mxu2 }
 0x212   : > { %v4021_v47 = vpop.f32.mrf.mxu3 }
 0x213   : > { %v4062_v24 = vpop.permute.xlu0 %1416 }
 0x214   : > { %vm1441_vm8 = vcmp.eq.s32.totalorder %v4062_v24, %v3500_v27 }
 0x215   : > { %3238 = vset.pattern.permute.xlu1 %v3343_v25  ;;  %1999 = vperm.xlu0 %3237, %v4030_v3  }
 0x216   : > { %2995 = vmatmul.msk.bf16.vlgmr.msra.gmra.mxu2 %vm356_vm2, %v1478_v34  ;;  %1990 = vperm.xlu1 %3238, %v3323_v54   ;;  %v1707_v34 = vpop.permute.xlu2 %1706 }
 0x217   : > { %vm1731_vm11 = vcmp.eq.s32.totalorder %v1707_v34, %v3500_v27  ;;  %3241 = vset.pattern.permute.xlu2 %v3344_v36 }
 0x218   : > { %2286 = vperm.xlu2 %3241, %v4015_v35   ;;  %v4098_v35 = vpop.permute.xlu1 %1422 }
 0x219   : > { %v939_v52 = vpop.f32.mrf.mxu2 }
 0x21a   : > { %v792_v17 = vpop.f32.mrf.mxu3 }
 0x21b   : > { %v4036_v42 = vadd.f32 %v792_v17, %v3953_v45  ;;  %v3028_v45 = vsel %vm1729_vm7, 1.0, %v3338_v31  ;;  %v1249_v18 = vpop.f32.mrf.mxu0  ;;  %v4080_v8 = vpop.permute.xlu0 %1419  ;;  %vm1440_vm7 = vcmp.eq.s32.totalorder %v4060_v5, %v3500_v27 }
 0x21c   : > { %v1772_v16 = vpack.c.bf16 %v3028_v45, %v3027_v58 }
 0x21d   : > { %3243 = vset.pattern.permute.xlu0 %v3344_v36 }
 0x21e   : > { %3239 = vset.pattern.permute.xlu1 %v3344_v36  ;;  %2292 = vperm.xlu0 %3243, %v3324_v29   ;;  %v1710_v45 = vpop.permute.xlu2 %1709 }
 0x21f   : > { %2280 = vperm.xlu1 %3239, %v3323_v54   ;;  %3039 = vmatmul.msk.bf16.gmra.mxu0 %vm356_vm2, %v1772_v16  ;;  %vm1732_vm12 = vcmp.eq.s32.totalorder %v1710_v45, %v3500_v27 }
 0x220   : > { %2289 = vperm.xlu2 %3241, %v4030_v3   ;;  %v4112_v3 = vpop.permute.xlu1 %1425 }
 0x221   : > { %v941_v57 = vpop.f32.mrf.mxu2 }
 0x222   : > { %v983_v28 = vpack.c.bf16 %v941_v57, %v939_v52  ;;  %v4052_v26 = vpop.f32.mrf.mxu3  ;;  %v2983_v52 = vsel %vm1434_vm10, 1.0, %v3338_v31  ;;  %v3031_v57 = vsel %vm1732_vm12, 1.0, %v3338_v31  ;;  %vm1442_vm12 = vcmp.eq.s32.totalorder %v4080_v8, %v3500_v27 }
 0x223   : > { %v1251_v37 = vpop.f32.mrf.mxu0  ;;  %v1480_v6 = vpack.c.bf16 %v2984_v48, %v2983_v52  ;;  %v1713_v61 = vpop.permute.xlu0 %1712  ;;  %v2988_v48 = vsel %vm1439_vm1, 1.0, %v3338_v31  ;;  %v2987_v52 = vsel %vm1438_vm3, 1.0, %v3338_v31  ;;  %vm1444_vm3 = vcmp.eq.s32.totalorder %v4112_v3, %v3500_v27 }
 0x224   : > { %2931 = vmatmul.msk.bf16.vlgmr.msrb.gmra.mxu3 %vm643_vm0, %v983_v28  ;;  %v1277_v44 = vpack.c.bf16 %v1251_v37, %v1249_v18  ;;  %vm1733_vm13 = vcmp.eq.s32.totalorder %v1713_v61, %v3500_v27  ;;  %v2985_v28 = vsel %vm1436_vm15, 1.0, %v3338_v31 }
 0x225   : > { %v3032_v16 = vsel %vm1733_vm13, 1.0, %v3338_v31 }
 0x226   : > { %2996 = vmatmul.msk.bf16.gmra.mxu2 %vm356_vm2, %v1479_v2  ;;  %2975 = vmatmul.msk.bf16.gmra.mxu1 %vm643_vm0, %v1277_v44  ;;  %v1774_v18 = vpack.c.bf16 %v3032_v16, %v3031_v57  ;;  %v4110_v11 = vpop.permute.xlu2 %1428  ;;  %v2989_v57 = vsel %vm1440_vm7, 1.0, %v3338_v31  ;;  %v2990_v16 = vsel %vm1441_vm8, 1.0, %v3338_v31 }
 0x227   : > { %2283 = vperm.xlu1 %3239, %v3325_v40   ;;  %v1483_v5 = vpack.c.bf16 %v2990_v16, %v2989_v57  ;;  %vm1445_vm1 = vcmp.eq.s32.totalorder %v4110_v11, %v3500_v27  ;;  %v3158_v11 = vld [vmem:[%s4688_s2 + $0x68] sm:$0xff] }
 0x228   : > { %3244 = vset.pattern.permute.xlu2 %v3343_v25  ;;  %2193 = vmatpush.bf16.msrb.mxu3 %v3158_v11 }
 0x229   : > { %v944_v12 = vpop.f32.mrf.mxu2 }
 0x22a   : > { %v797_v30 = vpop.f32.mrf.mxu3 }
 0x22b   : > { %v4066_v9 = vadd.f32 %v797_v30, %v3994_v20  ;;  %v3030_v20 = vsel %vm1731_vm11, 1.0, %v3338_v31  ;;  %v1254_v17 = vpop.f32.mrf.mxu0  ;;  %v3327_v30 = vld [vmem:[%s3386_s21 + $0x78] sm:$0xff]  ;;  %vm1443_vm11 = vcmp.eq.s32.totalorder %v4098_v35, %v3500_v27 }
 0x22c   : > { %v1773_v54 = vpack.c.bf16 %v3030_v20, %v3029_v41  ;;  %2008 = vperm.xlu2 %3244, %v3327_v30   ;;  %v3155_v41 = vld [vmem:[%s4688_s2 + $0x50] sm:$0xff] }
 0x22d   : > { %1904 = vmatpush.bf16.msra.mxu1 %v3155_v41 }
 0x22e   : > { %v1719_v20 = vpop.permute.xlu2 %1718 }
 0x22f   : > { %3242 = vset.pattern.permute.xlu1 %v3343_v25  ;;  %3040 = vmatmul.msk.bf16.gmra.mxu0 %vm356_vm2, %v1773_v54  ;;  %v1716_v25 = vpop.permute.xlu1 %1715  ;;  %vm1735_vm4 = vcmp.eq.s32.totalorder %v1719_v20, %v3500_v27 }
 0x230   : > { %2002 = vperm.xlu1 %3242, %v3324_v29   ;;  %v2986_v29 = vsel %vm1437_vm14, 1.0, %v3338_v31  ;;  %vm1734_vm5 = vcmp.eq.s32.totalorder %v1716_v25, %v3500_v27 }
 0x231   : > { %v946_v53 = vpop.f32.mrf.mxu2  ;;  %v1481_v37 = vpack.c.bf16 %v2986_v29, %v2985_v28  ;;  %v3033_v54 = vsel %vm1734_vm5, 1.0, %v3338_v31 }
 0x232   : > { %v984_v55 = vpack.c.bf16 %v946_v53, %v944_v12  ;;  %v3034_v53 = vsel %vm1735_vm4, 1.0, %v3338_v31 }
 0x233   : > { %v1256_v58 = vpop.f32.mrf.mxu0  ;;  %v1775_v21 = vpack.c.bf16 %v3034_v53, %v3033_v54 }
 0x234   : > { %2932 = vmatmul.msk.bf16.gmra.mxu3 %vm643_vm0, %v984_v55  ;;  %v1278_v60 = vpack.c.bf16 %v1256_v58, %v1254_v17  ;;  %3246 = vset.pattern.permute.xlu2 %v3344_v36  ;;  %v1482_v55 = vpack.c.bf16 %v2988_v48, %v2987_v52  ;;  %v2992_v48 = vsel %vm1443_vm11, 1.0, %v3338_v31  ;;  %v2991_v52 = vsel %vm1442_vm12, 1.0, %v3338_v31 }
 0x235   : > { %2298 = vperm.xlu2 %3246, %v3327_v30   ;;  %v4154_v30 = vpop.f32.mrf.mxu1  ;;  %v1484_v8 = vpack.c.bf16 %v2992_v48, %v2991_v52 }
 0x236   : > { %2997 = vmatmul.msk.bf16.gmra.mxu2 %vm356_vm2, %v1480_v6  ;;  %2976 = vmatmul.msk.bf16.gmra.mxu1 %vm643_vm0, %v1278_v60  ;;  %v2254_v61 = vpop.permute.xlu2 %2253 }
 0x237   : > { %vm2300_vm6 = vcmp.eq.s32.totalorder %v2254_v61, %v3500_v27 }
 0x238   : > { %2005 = vperm.xlu1 %3242, %v3326_v15  }
 0x239   : > { %v949_v38 = vpop.f32.mrf.mxu2 }
 0x23b   : > { %v1259_v13 = vpop.f32.mrf.mxu0 }
 0x23e   : > { %v4152_v24 = vpop.permute.xlu2 %1969 }
 0x23f   : > { %3041 = vmatmul.msk.bf16.gmra.mxu0 %vm356_vm2, %v1774_v18 }
 0x240   : > { %3245 = vset.pattern.permute.xlu1 %v3344_v36  ;;  %v3099_v36 = vsel %vm2300_vm6, 1.0, %v3338_v31 }
 0x241   : > { %v951_v2 = vpop.f32.mrf.mxu2  ;;  %2295 = vperm.xlu1 %3245, %v3326_v15  }
 0x242   : > { %v985_v12 = vpack.c.bf16 %v951_v2, %v949_v38  ;;  %v4134_v38 = vpop.permute.xlu1 %1966 }
 0x243   : > { %v1261_v40 = vpop.f32.mrf.mxu0  ;;  %vm2011_vm4 = vcmp.eq.s32.totalorder %v4134_v38, %v3500_v27 }
 0x244   : > { %2933 = vmatmul.msk.bf16.gmra.mxu3 %vm643_vm0, %v985_v12  ;;  %v1279_v34 = vpack.c.bf16 %v1261_v40, %v1259_v13  ;;  %v4147_v12 = vpop.permute.xlu0 %1963 }
 0x245   : > { %vm2010_vm5 = vcmp.eq.s32.totalorder %v4147_v12, %v3500_v27 }
 0x246   : > { %2998 = vmatmul.msk.bf16.gmra.mxu2 %vm356_vm2, %v1481_v37  ;;  %2977 = vmatmul.msk.bf16.gmra.mxu1 %vm643_vm0, %v1279_v34  ;;  %v2263_v20 = vpop.permute.xlu2 %2262 }
 0x247   : > { %vm2303_vm13 = vcmp.eq.s32.totalorder %v2263_v20, %v3500_v27 }
 0x248   : > { %v3102_v25 = vsel %vm2303_vm13, 1.0, %v3338_v31 }
 0x249   : > { %v954_v44 = vpop.f32.mrf.mxu2 }
 0x24a   : > { %v2257_v15 = vpop.permute.xlu1 %2256 }
 0x24b   : > { %v1264_v17 = vpop.f32.mrf.mxu0  ;;  %vm2301_vm9 = vcmp.eq.s32.totalorder %v2257_v15, %v3500_v27 }
 0x24c   : > { %v3100_v29 = vsel %vm2301_vm9, 1.0, %v3338_v31  ;;  %vm2012_vm9 = vcmp.eq.s32.totalorder %v4152_v24, %v3500_v27 }
 0x24d   : > { %v2348_v13 = vpack.c.bf16 %v3100_v29, %v3099_v36  ;;  %v2993_v29 = vsel %vm1444_vm3, 1.0, %v3338_v31 }
 0x24e   : > { %v4156_v40 = vpop.permute.xlu0 %1972 }
 0x24f   : > { %3042 = vmatmul.msk.bf16.gmra.mxu0 %vm356_vm2, %v1775_v21 }
 0x251   : > { %v956_v50 = vpop.f32.mrf.mxu2 }
 0x252   : > { %v986_v6 = vpack.c.bf16 %v956_v50, %v954_v44  ;;  %v2260_v37 = vpop.permute.xlu1 %2259  ;;  %v4169_v50 = vpop.f32.mrf.mxu1 }
 0x253   : > { %v1266_v60 = vpop.f32.mrf.mxu0  ;;  %vm2302_vm10 = vcmp.eq.s32.totalorder %v2260_v37, %v3500_v27 }
 0x254   : > { %2934 = vmatmul.msk.bf16.gmra.mxu3 %vm643_vm0, %v986_v6  ;;  %v1280_v45 = vpack.c.bf16 %v1266_v60, %v1264_v17  ;;  %v3101_v34 = vsel %vm2302_vm10, 1.0, %v3338_v31  ;;  %v2266_v60 = vpop.permute.xlu2 %2265  ;;  %vm2013_vm10 = vcmp.eq.s32.totalorder %v4156_v40, %v3500_v27 }
 0x255   : > { %v2349_v54 = vpack.c.bf16 %v3102_v25, %v3101_v34  ;;  %vm2304_vm14 = vcmp.eq.s32.totalorder %v2266_v60, %v3500_v27  ;;  %v3160_v34 = vld [vmem:[%s4688_s2 + $0x78] sm:$0xff]  ;;  %v3062_v11 = vsel %vm2013_vm10, 1.0, %v3338_v31 }
 0x256   : > { %2999 = vmatmul.msk.bf16.gmra.mxu2 %vm356_vm2, %v1482_v55  ;;  %2978 = vmatmul.msk.bf16.gmra.mxu1 %vm643_vm0, %v1280_v45  ;;  %v3103_v36 = vsel %vm2304_vm14, 1.0, %v3338_v31 }
 0x257   : > { %2483 = vmatpush.bf16.msrb.mxu1 %v3160_v34 }
 0x259   : > { %v959_v58 = vpop.f32.mrf.mxu2 }
 0x25a   : > { %v4176_v6 = vpop.f32.mrf.mxu1 }
 0x25b   : > { %v1809_v28 = vpop.f32.mrf.mxu0 }
 0x25c   : > { %v4199_v3 = vpop.permute.xlu2 %1984 }
 0x25d   : > { %vm2017_vm3 = vcmp.eq.s32.totalorder %v4199_v3, %v3500_v27 }
 0x25e   : > { %v4171_v17 = vpop.permute.xlu0 %1975 }
 0x25f   : > { %3115 = vmatmul.msk.bf16.vlgmr.msrb.gmra.mxu0 %vm356_vm2, %v2348_v13  ;;  %vm2014_vm14 = vcmp.eq.s32.totalorder %v4171_v17, %v3500_v27 }
 0x261   : > { %v961_v18 = vpop.f32.mrf.mxu2 }
 0x262   : > { %v987_v2 = vpack.c.bf16 %v961_v18, %v959_v58  ;;  %v2994_v18 = vsel %vm1445_vm1, 1.0, %v3338_v31 }
 0x263   : > { %v1811_v44 = vpop.f32.mrf.mxu0  ;;  %v1485_v37 = vpack.c.bf16 %v2994_v18, %v2993_v29 }
 0x264   : > { %2935 = vmatmul.msk.bf16.gmra.mxu3 %vm643_vm0, %v987_v2  ;;  %v1853_v41 = vpack.c.bf16 %v1811_v44, %v1809_v28  ;;  %v4191_v2 = vpop.f32.mrf.mxu1  ;;  %v2275_v48 = vpop.permute.xlu2 %2274 }
 0x265   : > { %vm2307_vm6 = vcmp.eq.s32.totalorder %v2275_v48, %v3500_v27 }
 0x266   : > { %3000 = vmatmul.msk.bf16.gmra.mxu2 %vm356_vm2, %v1483_v5  ;;  %3051 = vmatmul.msk.bf16.vlgmr.msra.gmra.mxu1 %vm643_vm0, %v1853_v41 }
 0x269   : > { %v964_v19 = vpop.f32.mrf.mxu2 }
 0x26b   : > { %v1814_v35 = vpop.f32.mrf.mxu0 }
 0x26c   : > { %v4203_v41 = vpop.f32.mrf.mxu1 }
 0x26e   : > { %v2269_v61 = vpop.permute.xlu0 %2268  ;;  %v4187_v57 = vpop.permute.xlu1 %1978 }
 0x26f   : > { %3116 = vmatmul.msk.bf16.gmra.mxu0 %vm356_vm2, %v2349_v54  ;;  %vm2305_vm15 = vcmp.eq.s32.totalorder %v2269_v61, %v3500_v27  ;;  %v3059_v54 = vsel %vm2010_vm5, 1.0, %v3338_v31  ;;  %vm2015_vm13 = vcmp.eq.s32.totalorder %v4187_v57, %v3500_v27 }
 0x270   : > { %v3104_v15 = vsel %vm2305_vm15, 1.0, %v3338_v31 }
 0x271   : > { %v966_v53 = vpop.f32.mrf.mxu2  ;;  %v2350_v16 = vpack.c.bf16 %v3104_v15, %v3103_v36 }
 0x272   : > { %v988_v21 = vpack.c.bf16 %v966_v53, %v964_v19  ;;  %v3060_v53 = vsel %vm2011_vm4, 1.0, %v3338_v31 }
 0x273   : > { %v1816_v58 = vpop.f32.mrf.mxu0  ;;  %v2058_v12 = vpack.c.bf16 %v3060_v53, %v3059_v54 }
 0x274   : > { %2936 = vmatmul.msk.bf16.gmra.mxu3 %vm643_vm0, %v988_v21  ;;  %v1854_v45 = vpack.c.bf16 %v1816_v58, %v1814_v35  ;;  %v3106_v21 = vsel %vm2307_vm6, 1.0, %v3338_v31 }
 0x276   : > { %3001 = vmatmul.msk.bf16.gmra.mxu2 %vm356_vm2, %v1484_v8  ;;  %3052 = vmatmul.msk.bf16.gmra.mxu1 %vm643_vm0, %v1854_v45  ;;  %v4201_v19 = vpop.permute.xlu1 %1981 }
 0x277   : > { %v4243_v40 = vpop.permute.xlu0 %1987  ;;  %vm2016_vm4 = vcmp.eq.s32.totalorder %v4201_v19, %v3500_v27 }
 0x279   : > { %v969_v55 = vpop.f32.mrf.mxu2 }
 0x27b   : > { %v1819_v5 = vpop.f32.mrf.mxu0 }
 0x27f   : > { %3117 = vmatmul.msk.bf16.gmra.mxu0 %vm356_vm2, %v2350_v16  ;;  %v2272_v52 = vpop.permute.xlu1 %2271  ;;  %v2278_v16 = vpop.permute.xlu2 %2277 }
 0x280   : > { %vm2306_vm7 = vcmp.eq.s32.totalorder %v2272_v52, %v3500_v27  ;;  %vm2308_vm8 = vcmp.eq.s32.totalorder %v2278_v16, %v3500_v27 }
 0x281   : > { %v971_v28 = vpop.f32.mrf.mxu2  ;;  %v3105_v35 = vsel %vm2306_vm7, 1.0, %v3338_v31  ;;  %v3107_v29 = vsel %vm2308_vm8, 1.0, %v3338_v31  ;;  %vm2018_vm7 = vcmp.eq.s32.totalorder %v4243_v40, %v3500_v27 }
 0x282   : > { %v989_v13 = vpack.c.bf16 %v971_v28, %v969_v55  ;;  %v2351_v8 = vpack.c.bf16 %v3106_v21, %v3105_v35  ;;  %v4219_v55 = vpop.f32.mrf.mxu1 }
 0x283   : > { %v1821_v20 = vpop.f32.mrf.mxu0 }
 0x284   : > { %2937 = vmatmul.msk.bf16.gmra.mxu3 %vm643_vm0, %v989_v13  ;;  %v1855_v25 = vpack.c.bf16 %v1821_v20, %v1819_v5  ;;  %v4235_v13 = vpop.f32.mrf.mxu3 }
 0x286   : > { %3002 = vmatmul.msk.bf16.gmra.mxu2 %vm356_vm2, %v1485_v37  ;;  %3053 = vmatmul.msk.bf16.gmra.mxu1 %vm643_vm0, %v1855_v25  ;;  %v3061_v37 = vsel %vm2012_vm9, 1.0, %v3338_v31 }
 0x287   : > { %v2059_v48 = vpack.c.bf16 %v3062_v11, %v3061_v37  ;;  %v4248_v52 = vpop.permute.xlu2 %1993 }
 0x288   : > { %v4224_v45 = vpop.permute.xlu1 %1990  ;;  %vm2020_vm10 = vcmp.eq.s32.totalorder %v4248_v52, %v3500_v27 }
 0x289   : > { %v974_v44 = vpop.f32.mrf.mxu2  ;;  %vm2019_vm6 = vcmp.eq.s32.totalorder %v4224_v45, %v3500_v27 }
 0x28a   : > { %v4226_v36 = vpop.f32.mrf.mxu1 }
 0x28b   : > { %v1824_v60 = vpop.f32.mrf.mxu0 }
 0x28f   : > { %3118 = vmatmul.msk.bf16.gmra.mxu0 %vm356_vm2, %v2351_v8 }
 0x291   : > { %v976_v38 = vpop.f32.mrf.mxu2  ;;  %v2281_v28 = vpop.permute.xlu1 %2280 }
 0x292   : > { %v990_v58 = vpack.c.bf16 %v976_v38, %v974_v44  ;;  %vm2309_vm11 = vcmp.eq.s32.totalorder %v2281_v28, %v3500_v27  ;;  %v4241_v20 = vpop.f32.mrf.mxu1  ;;  %v3063_v28 = vsel %vm2014_vm14, 1.0, %v3338_v31 }
 0x293   : > { %v1826_v15 = vpop.f32.mrf.mxu0  ;;  %v3108_v5 = vsel %vm2309_vm11, 1.0, %v3338_v31 }
 0x294   : > { %2938 = vmatmul.msk.bf16.gmra.mxu3 %vm643_vm0, %v990_v58  ;;  %v1856_v18 = vpack.c.bf16 %v1826_v15, %v1824_v60  ;;  %v2352_v34 = vpack.c.bf16 %v3108_v5, %v3107_v29  ;;  %v4257_v60 = vpop.permute.xlu0 %1996  ;;  %v3064_v29 = vsel %vm2015_vm13, 1.0, %v3338_v31 }
 0x295   : > { %v2060_v11 = vpack.c.bf16 %v3064_v29, %v3063_v28  ;;  %v3157_v29 = vld [vmem:[%s4688_s2 + $0x60] sm:$0xff]  ;;  %vm2021_vm11 = vcmp.eq.s32.totalorder %v4257_v60, %v3500_v27 }
 0x296   : > { %3075 = vmatmul.msk.bf16.vlgmr.msrb.gmra.mxu2 %vm356_vm2, %v2058_v12  ;;  %3054 = vmatmul.msk.bf16.gmra.mxu1 %vm643_vm0, %v1856_v18 }
 0x297   : > { %2194 = vmatpush.bf16.msrb.mxu3 %v3157_v29 }
 0x299   : > { %v1519_v61 = vpop.f32.mrf.mxu2  ;;  %v2284_v38 = vpop.permute.xlu1 %2283 }
 0x29a   : > { %vm2310_vm12 = vcmp.eq.s32.totalorder %v2284_v38, %v3500_v27  ;;  %v770_v38 = vadd.f32 %v3888_v56, %v3830_v32 }
 0x29c   : > { %v1829_v25 = vpop.f32.mrf.mxu0 }
 0x29f   : > { %3119 = vmatmul.msk.bf16.gmra.mxu0 %vm356_vm2, %v2352_v34  ;;  %v4279_v34 = vpop.permute.xlu0 %1999 }
 0x2a0   : > { %vm2022_vm13 = vcmp.eq.s32.totalorder %v4279_v34, %v3500_v27 }
 0x2a1   : > { %v1521_v44 = vpop.f32.mrf.mxu2 }
 0x2a2   : > { %v1563_v24 = vpack.c.bf16 %v1521_v44, %v1519_v61  ;;  %v765_v61 = vadd.f32 %v3858_v46, %v3801_v0 }
 0x2a3   : > { %v4251_v35 = vpop.f32.mrf.mxu1 }
 0x2a4   : > { %3011 = vmatmul.msk.bf16.vlgmr.msra.gmra.mxu3 %vm643_vm0, %v1563_v24  ;;  %v1831_v8 = vpop.f32.mrf.mxu0 }
 0x2a5   : > { %v1857_v58 = vpack.c.bf16 %v1831_v8, %v1829_v25 }
 0x2a6   : > { %3076 = vmatmul.msk.bf16.gmra.mxu2 %vm356_vm2, %v2059_v48 }
 0x2a7   : > { %v1036_v53 = vpop.f32.mrf.mxu3  ;;  %3055 = vmatmul.msk.bf16.gmra.mxu1 %vm643_vm0, %v1857_v58  ;;  %v2293_v58 = vpop.permute.xlu0 %2292 }
 0x2a8   : > { %v1076_v54 = vadd.f32 %v1036_v53, %v3838_v1  ;;  %v3109_v1 = vsel %vm2310_vm12, 1.0, %v3338_v31  ;;  %vm2313_vm5 = vcmp.eq.s32.totalorder %v2293_v58, %v3500_v27 }
 0x2a9   : > { %v1524_v21 = vpop.f32.mrf.mxu2  ;;  %v3112_v32 = vsel %vm2313_vm5, 1.0, %v3338_v31 }
 0x2aa   : > { %v4254_v12 = vadd.f32 %v4154_v30, %v1076_v54  ;;  %v2287_v30 = vpop.permute.xlu2 %2286 }
 0x2ab   : > { %vm2311_vm15 = vcmp.eq.s32.totalorder %v2287_v30, %v3500_v27  ;;  %v4271_v5 = vpop.f32.mrf.mxu1 }
 0x2ac   : > { %v3110_v18 = vsel %vm2311_vm15, 1.0, %v3338_v31  ;;  %v1834_v37 = vpop.f32.mrf.mxu0 }
 0x2ad   : > { %v2353_v46 = vpack.c.bf16 %v3110_v18, %v3109_v1  ;;  %v3065_v1 = vsel %vm2016_vm4, 1.0, %v3338_v31 }
 0x2af   : > { %v1038_v15 = vpop.f32.mrf.mxu3  ;;  %3120 = vmatmul.msk.bf16.gmra.mxu0 %vm356_vm2, %v2353_v46 }
 0x2b0   : > { %v1077_v16 = vadd.f32 %v1038_v15, %v765_v61  ;;  %v3066_v61 = vsel %vm2017_vm3, 1.0, %v3338_v31 }
 0x2b1   : > { %v1526_v0 = vpop.f32.mrf.mxu2  ;;  %v2061_v18 = vpack.c.bf16 %v3066_v61, %v3065_v1 }
 0x2b2   : > { %v1564_v57 = vpack.c.bf16 %v1526_v0, %v1524_v21  ;;  %v4274_v17 = vadd.f32 %v4169_v50, %v1077_v16  ;;  %v2290_v54 = vpop.permute.xlu2 %2289 }
 0x2b3   : > { %v4282_v48 = vpop.f32.mrf.mxu1  ;;  %vm2312_vm1 = vcmp.eq.s32.totalorder %v2290_v54, %v3500_v27 }
 0x2b4   : > { %3012 = vmatmul.msk.bf16.gmra.mxu3 %vm643_vm0, %v1564_v57  ;;  %v1836_v53 = vpop.f32.mrf.mxu0  ;;  %v3111_v8 = vsel %vm2312_vm1, 1.0, %v3338_v31 }
 0x2b5   : > { %v1858_v21 = vpack.c.bf16 %v1836_v53, %v1834_v37  ;;  %v2354_v15 = vpack.c.bf16 %v3112_v32, %v3111_v8 }
 0x2b6   : > { %3077 = vmatmul.msk.bf16.gmra.mxu2 %vm356_vm2, %v2060_v11 }
 0x2b7   : > { %v1041_v44 = vpop.f32.mrf.mxu3  ;;  %3056 = vmatmul.msk.bf16.gmra.mxu1 %vm643_vm0, %v1858_v21 }
 0x2b8   : > { %v1078_v24 = vadd.f32 %v1041_v44, %v3871_v51  ;;  %v4320_v44 = vpop.permute.xlu1 %2002 }
 0x2b9   : > { %v1529_v25 = vpop.f32.mrf.mxu2  ;;  %vm2023_vm12 = vcmp.eq.s32.totalorder %v4320_v44, %v3500_v27 }
 0x2ba   : > { %v4285_v50 = vadd.f32 %v4176_v6, %v1078_v24  ;;  %v4333_v45 = vpop.permute.xlu2 %2008 }
 0x2bb   : > { %v4300_v56 = vpop.f32.mrf.mxu1  ;;  %vm2025_vm14 = vcmp.eq.s32.totalorder %v4333_v45, %v3500_v27 }
 0x2bc   : > { %v1839_v16 = vpop.f32.mrf.mxu0 }
 0x2bf   : > { %v1043_v51 = vpop.f32.mrf.mxu3  ;;  %3121 = vmatmul.msk.bf16.gmra.mxu0 %vm356_vm2, %v2354_v15 }
 0x2c0   : > { %v1079_v6 = vadd.f32 %v1043_v51, %v770_v38 }
 0x2c1   : > { %v1531_v30 = vpop.f32.mrf.mxu2 }
 0x2c2   : > { %v1565_v3 = vpack.c.bf16 %v1531_v30, %v1529_v25  ;;  %v4303_v19 = vadd.f32 %v4191_v2, %v1079_v6  ;;  %v3159_v2 = vld [vmem:[%s4688_s2 + $0x70] sm:$0xff]  ;;  %v3068_v25 = vsel %vm2019_vm6, 1.0, %v3338_v31  ;;  %v4338_v6 = vpop.permute.xlu1 %2005  ;;  %v2299_v32 = vpop.permute.xlu2 %2298 }
 0x2c3   : > { %v4312_v57 = vpop.f32.mrf.mxu1  ;;  %2484 = vmatpush.bf16.msrb.mxu1 %v3159_v2  ;;  %vm2315_vm8 = vcmp.eq.s32.totalorder %v2299_v32, %v3500_v27  ;;  %vm2024_vm15 = vcmp.eq.s32.totalorder %v4338_v6, %v3500_v27 }
 0x2c4   : > { %3013 = vmatmul.msk.bf16.gmra.mxu3 %vm643_vm0, %v1565_v3  ;;  %v1841_v37 = vpop.f32.mrf.mxu0 }
 0x2c5   : > { %v1859_v24 = vpack.c.bf16 %v1841_v37, %v1839_v16  ;;  %v3114_v16 = vsel %vm2315_vm8, 1.0, %v3338_v31 }
 0x2c6   : > { %3078 = vmatmul.msk.bf16.gmra.mxu2 %vm356_vm2, %v2061_v18  ;;  %v780_v18 = vadd.f32 %v3944_v43, %v3886_v49 }
 0x2c7   : > { %v1046_v28 = vpop.f32.mrf.mxu3  ;;  %3057 = vmatmul.msk.bf16.gmra.mxu1 %vm643_vm0, %v1859_v24 }
 0x2c8   : > { %v1080_v0 = vadd.f32 %v1046_v28, %v3896_v59  ;;  %v775_v59 = vadd.f32 %v3910_v23, %v3855_v4 }
 0x2c9   : > { %v1534_v46 = vpop.f32.mrf.mxu2 }
 0x2ca   : > { %v4318_v11 = vadd.f32 %v4203_v41, %v1080_v0  ;;  %v3067_v41 = vsel %vm2018_vm7, 1.0, %v3338_v31  ;;  %v3069_v0 = vsel %vm2020_vm10, 1.0, %v3338_v31 }
 0x2cb   : > { %v4331_v38 = vpop.f32.mrf.mxu1  ;;  %v2062_v51 = vpack.c.bf16 %v3068_v25, %v3067_v41 }
 0x2cc   : > { %v1844_v58 = vpop.f32.mrf.mxu0 }
 0x2cf   : > { %v1048_v53 = vpop.f32.mrf.mxu3 }
 0x2d0   : > { %v1081_v54 = vadd.f32 %v1048_v53, %v775_v59 }
 0x2d1   : > { %v1536_v21 = vpop.f32.mrf.mxu2 }
 0x2d2   : > { %v1566_v8 = vpack.c.bf16 %v1536_v21, %v1534_v46  ;;  %v4336_v40 = vadd.f32 %v4219_v55, %v1081_v54  ;;  %v2296_v55 = vpop.permute.xlu1 %2295  ;;  %v3070_v46 = vsel %vm2021_vm11, 1.0, %v3338_v31 }
 0x2d3   : > { %v4343_v1 = vpop.f32.mrf.mxu1  ;;  %vm2314_vm9 = vcmp.eq.s32.totalorder %v2296_v55, %v3500_v27  ;;  %v2063_v52 = vpack.c.bf16 %v3070_v46, %v3069_v0 }
 0x2d4   : > { %3014 = vmatmul.msk.bf16.gmra.mxu3 %vm643_vm0, %v1566_v8  ;;  %v1846_v30 = vpop.f32.mrf.mxu0  ;;  %v3072_v8 = vsel %vm2023_vm12, 1.0, %v3338_v31 }
 0x2d5   : > { %v1860_v15 = vpack.c.bf16 %v1846_v30, %v1844_v58 }
 0x2d6   : > { %3079 = vmatmul.msk.bf16.gmra.mxu2 %vm356_vm2, %v2062_v51 }
 0x2d7   : > { %v1051_v4 = vpop.f32.mrf.mxu3  ;;  %3058 = vmatmul.msk.bf16.gmra.mxu1 %vm643_vm0, %v1860_v15 }
 0x2d8   : > { %v1082_v23 = vadd.f32 %v1051_v4, %v3926_v33  ;;  %v3113_v33 = vsel %vm2314_vm9, 1.0, %v3338_v31 }
 0x2d9   : > { %v1539_v61 = vpop.f32.mrf.mxu2 }
 0x2da   : > { %v4346_v3 = vadd.f32 %v4226_v36, %v1082_v23  ;;  %v2355_v36 = vpack.c.bf16 %v3114_v16, %v3113_v33 }
 0x2db   : > { %v4365_v43 = vpop.f32.mrf.mxu1 }
 0x2dc   : > { %3122 = vmatmul.msk.bf16.gmra.mxu0 %vm356_vm2, %v2355_v36  ;;  %v2389_v24 = vpop.f32.mrf.mxu0 }
 0x2df   : > { %v1053_v29 = vpop.f32.mrf.mxu3 }
 0x2e0   : > { %v1083_v28 = vadd.f32 %v1053_v29, %v780_v18  ;;  %v3073_v18 = vsel %vm2024_vm15, 1.0, %v3338_v31 }
 0x2e1   : > { %v1541_v2 = vpop.f32.mrf.mxu2 }
 0x2e2   : > { %v1567_v37 = vpack.c.bf16 %v1541_v2, %v1539_v61  ;;  %v4363_v49 = vadd.f32 %v4241_v20, %v1083_v28  ;;  %v785_v20 = vadd.f32 %v3977_v7, %v3908_v63 }
 0x2e3   : > { %v4373_v21 = vpop.f32.mrf.mxu1 }
 0x2e4   : > { %3015 = vmatmul.msk.bf16.gmra.mxu3 %vm643_vm0, %v1567_v37  ;;  %v2391_v41 = vpop.f32.mrf.mxu0 }
 0x2e5   : > { %v2433_v54 = vpack.c.bf16 %v2391_v41, %v2389_v24 }
 0x2e6   : > { %3080 = vmatmul.msk.bf16.gmra.mxu2 %vm356_vm2, %v2063_v52 }
 0x2e7   : > { %v1056_v60 = vpop.f32.mrf.mxu3  ;;  %3131 = vmatmul.msk.bf16.vlgmr.msrb.gmra.mxu1 %vm643_vm0, %v2433_v54 }
 0x2e8   : > { %v1084_v59 = vadd.f32 %v1056_v60, %v3956_v22 }
 0x2e9   : > { %v1544_v25 = vpop.f32.mrf.mxu2 }
 0x2ea   : > { %v4371_v53 = vadd.f32 %v4251_v35, %v1084_v59  ;;  %v3071_v35 = vsel %vm2022_vm13, 1.0, %v3338_v31 }
 0x2eb   : > { %v2064_v30 = vpack.c.bf16 %v3072_v8, %v3071_v35  ;;  %v4389_v7 = vpop.f32.mrf.mxu1 }
 0x2ec   : > { %v2394_v23 = vpop.f32.mrf.mxu0 }
 0x2ef   : > { %v1058_v22 = vpop.f32.mrf.mxu3 }
 0x2f0   : > { %v1085_v51 = vadd.f32 %v1058_v22, %v785_v20 }
 0x2f1   : > { %v1546_v58 = vpop.f32.mrf.mxu2 }
 0x2f2   : > { %v1568_v4 = vpack.c.bf16 %v1546_v58, %v1544_v25  ;;  %v4385_v61 = vadd.f32 %v4271_v5, %v1085_v51  ;;  %v790_v5 = vadd.f32 %v4021_v47, %v3942_v14 }
 0x2f3   : > { %v1911_v36 = vpop.f32.mrf.mxu1 }
 0x2f4   : > { %3016 = vmatmul.msk.bf16.gmra.mxu3 %vm643_vm0, %v1568_v4  ;;  %v2396_v32 = vpop.f32.mrf.mxu0 }
 0x2f5   : > { %v2434_v55 = vpack.c.bf16 %v2396_v32, %v2394_v23 }
 0x2f6   : > { %3081 = vmatmul.msk.bf16.gmra.mxu2 %vm356_vm2, %v2064_v30 }
 0x2f7   : > { %v1061_v63 = vpop.f32.mrf.mxu3  ;;  %3132 = vmatmul.msk.bf16.gmra.mxu1 %vm643_vm0, %v2434_v55 }
 0x2f8   : > { %v1086_v34 = vadd.f32 %v1061_v63, %v3997_v10  ;;  %v3074_v10 = vsel %vm2025_vm14, 1.0, %v3338_v31 }
 0x2f9   : > { %v1549_v44 = vpop.f32.mrf.mxu2  ;;  %v2065_v14 = vpack.c.bf16 %v3074_v10, %v3073_v18 }
 0x2fa   : > { %v4393_v15 = vadd.f32 %v4282_v48, %v1086_v34 }
 0x2fb   : > { %v1913_v31 = vpop.f32.mrf.mxu1 }
 0x2fc   : > { %v2399_v28 = vpop.f32.mrf.mxu0 }
 0x2ff   : > { %v1063_v16 = vpop.f32.mrf.mxu3 }
 0x300   : > { %v1087_v33 = vadd.f32 %v1063_v16, %v790_v5 }
 0x301   : > { %v1551_v48 = vpop.f32.mrf.mxu2 }
 0x302   : > { %v1569_v29 = vpack.c.bf16 %v1551_v48, %v1549_v44  ;;  %v4405_v0 = vadd.f32 %v4300_v56, %v1087_v33  ;;  %v795_v56 = vadd.f32 %v4052_v26, %v3975_v62  ;;  %v800_v26 = vadd.f32 %v4235_v13, %v4018_v39 }
 0x304   : > { %3017 = vmatmul.msk.bf16.gmra.mxu3 %vm643_vm0, %v1569_v29  ;;  %v2401_v6 = vpop.f32.mrf.mxu0 }
 0x305   : > { %v2435_v2 = vpack.c.bf16 %v2401_v6, %v2399_v28 }
 0x306   : > { %3082 = vmatmul.msk.bf16.gmra.mxu2 %vm356_vm2, %v2065_v14 }
 0x307   : > { %v1066_v47 = vpop.f32.mrf.mxu3  ;;  %3133 = vmatmul.msk.bf16.gmra.mxu1 %vm643_vm0, %v2435_v2 }
 0x308   : > { %v1088_v27 = vadd.f32 %v1066_v47, %v4036_v42  ;;  %v1916_v42 = vpop.f32.mrf.mxu1 }
 0x309   : > { %v1554_v45 = vpop.f32.mrf.mxu2 }
 0x30a   : > { %v4411_v46 = vadd.f32 %v4312_v57, %v1088_v27 }
 0x30c   : > { %v2404_v59 = vpop.f32.mrf.mxu0 }
 0x30f   : > { %v1068_v37 = vpop.f32.mrf.mxu3 }
 0x310   : > { %v1089_v24 = vadd.f32 %v1068_v37, %v795_v56 }
 0x311   : > { %v1556_v52 = vpop.f32.mrf.mxu2 }
 0x312   : > { %v1570_v60 = vpack.c.bf16 %v1556_v52, %v1554_v45  ;;  %v4417_v25 = vadd.f32 %v4331_v38, %v1089_v24  ;;  %v1918_v38 = vpop.f32.mrf.mxu1 }
 0x314   : > { %3018 = vmatmul.msk.bf16.gmra.mxu3 %vm643_vm0, %v1570_v60  ;;  %v2406_v20 = vpop.f32.mrf.mxu0 }
 0x315   : > { %v2436_v62 = vpack.c.bf16 %v2406_v20, %v2404_v59 }
 0x317   : > { %v1071_v57 = vpop.f32.mrf.mxu3  ;;  %3134 = vmatmul.msk.bf16.gmra.mxu1 %vm643_vm0, %v2436_v62 }
 0x318   : > { %v1090_v41 = vadd.f32 %v1071_v57, %v4066_v9 }
 0x319   : > { %v2099_v54 = vpop.f32.mrf.mxu2 }
 0x31a   : > { %v4422_v22 = vadd.f32 %v4343_v1, %v1090_v41  ;;  %v1921_v63 = vpop.f32.mrf.mxu1 }
 0x31c   : > { %v2409_v4 = vpop.f32.mrf.mxu0 }
 0x31f   : > { %v1073_v51 = vpop.f32.mrf.mxu3 }
 0x320   : > { %v1091_v8 = vadd.f32 %v1073_v51, %v800_v26 }
 0x321   : > { %v2101_v35 = vpop.f32.mrf.mxu2 }
 0x322   : > { %v2143_v58 = vpack.c.bf16 %v2101_v35, %v2099_v54  ;;  %v4428_v23 = vadd.f32 %v4365_v43, %v1091_v8  ;;  %v4440_v33 = vpop.f32.mrf.mxu1 }
 0x324   : > { %3091 = vmatmul.msk.bf16.vlgmr.msrb.gmra.mxu3 %vm643_vm0, %v2143_v58  ;;  %v2411_v34 = vpop.f32.mrf.mxu0 }
 0x325   : > { %v2437_v39 = vpack.c.bf16 %v2411_v34, %v2409_v4 }
 0x327   : > { %v1616_v9 = vpop.f32.mrf.mxu3  ;;  %3135 = vmatmul.msk.bf16.gmra.mxu1 %vm643_vm0, %v2437_v39 }
 0x328   : > { %v1656_v1 = vadd.f32 %v1616_v9, %v4254_v12 }
 0x329   : > { %v2104_v30 = vpop.f32.mrf.mxu2 }
 0x32a   : > { %v4433_v44 = vadd.f32 %v4373_v21, %v1656_v1  ;;  %v1926_v28 = vpop.f32.mrf.mxu1 }
 0x32c   : > { %v2414_v5 = vpop.f32.mrf.mxu0 }
 0x32f   : > { %v1618_v13 = vpop.f32.mrf.mxu3 }
 0x330   : > { %v1657_v32 = vadd.f32 %v1618_v13, %v4274_v17 }
 0x331   : > { %v2106_v55 = vpop.f32.mrf.mxu2 }
 0x332   : > { %v2144_v43 = vpack.c.bf16 %v2106_v55, %v2104_v30  ;;  %v4438_v16 = vadd.f32 %v4389_v7, %v1657_v32 }
 0x334   : > { %3092 = vmatmul.msk.bf16.gmra.mxu3 %vm643_vm0, %v2144_v43  ;;  %v2416_v18 = vpop.f32.mrf.mxu0 }
 0x335   : > { %v2438_v29 = vpack.c.bf16 %v2416_v18, %v2414_v5 }
 0x337   : > { %v1621_v12 = vpop.f32.mrf.mxu3  ;;  %3136 = vmatmul.msk.bf16.gmra.mxu1 %vm643_vm0, %v2438_v29 }
 0x338   : > { %v1658_v21 = vadd.f32 %v1621_v12, %v4285_v50  ;;  %v1928_v50 = vpop.f32.mrf.mxu1 }
 0x339   : > { %v2109_v10 = vpop.f32.mrf.mxu2 }
 0x33a   : > { %v4444_v48 = vadd.f32 %v1911_v36, %v1658_v21 }
 0x33c   : > { %v2419_v27 = vpop.f32.mrf.mxu0 }
 0x33f   : > { %v1623_v17 = vpop.f32.mrf.mxu3 }
 0x340   : > { %v1659_v14 = vadd.f32 %v1623_v17, %v4303_v19  ;;  %v1931_v59 = vpop.f32.mrf.mxu1 }
 0x341   : > { %v2111_v7 = vpop.f32.mrf.mxu2 }
 0x342   : > { %v2145_v47 = vpack.c.bf16 %v2111_v7, %v2109_v10  ;;  %v4448_v45 = vadd.f32 %v1913_v31, %v1659_v14 }
 0x344   : > { %3093 = vmatmul.msk.bf16.gmra.mxu3 %vm643_vm0, %v2145_v47  ;;  %v2421_v56 = vpop.f32.mrf.mxu0 }
 0x345   : > { %v2439_v24 = vpack.c.bf16 %v2421_v56, %v2419_v27 }
 0x347   : > { %v1626_v6 = vpop.f32.mrf.mxu3  ;;  %3137 = vmatmul.msk.bf16.gmra.mxu1 %vm643_vm0, %v2439_v24 }
 0x348   : > { %v1660_v2 = vadd.f32 %v1626_v6, %v4318_v11 }
 0x349   : > { %v2114_v36 = vpop.f32.mrf.mxu2 }
 0x34a   : > { %v4452_v37 = vadd.f32 %v1916_v42, %v1660_v2  ;;  %v1933_v42 = vpop.f32.mrf.mxu1 }
 0x34f   : > { %v1628_v52 = vpop.f32.mrf.mxu3 }
 0x350   : > { %v1661_v19 = vadd.f32 %v1628_v52, %v4336_v40 }
 0x351   : > { %v2116_v60 = vpop.f32.mrf.mxu2 }
 0x352   : > { %v2146_v31 = vpack.c.bf16 %v2116_v60, %v2114_v36  ;;  %v4456_v57 = vadd.f32 %v1918_v38, %v1661_v19  ;;  %v1936_v38 = vpop.f32.mrf.mxu1 }
 0x354   : > { %3094 = vmatmul.msk.bf16.gmra.mxu3 %vm643_vm0, %v2146_v31  ;;  %v4498_v31 = vld [vmem:[%s4689_s3] ss:$0 sm:$0xff] }
 0x357   : > { %v1631_v41 = vpop.f32.mrf.mxu3 }
 0x358   : > { %v1662_v11 = vadd.f32 %v1631_v41, %v4346_v3 }
 0x359   : > { %v2119_v54 = vpop.f32.mrf.mxu2  ;;  %v2424_v40 = vpop.f32.mrf.mxu0 }
 0x35a   : > { %v4460_v20 = vadd.f32 %v1921_v63, %v1662_v11  ;;  %v1938_v63 = vpop.f32.mrf.mxu1 }
 0x35f   : > { %v1633_v62 = vpop.f32.mrf.mxu3 }
 0x360   : > { %v4463_v26 = vadd.f32 %v1633_v62, %v4363_v49 }
 0x361   : > { %v2121_v51 = vpop.f32.mrf.mxu2  ;;  %v2426_v9 = vpop.f32.mrf.mxu0 }
 0x362   : > { %v2147_v8 = vpack.c.bf16 %v2121_v51, %v2119_v54  ;;  %v2440_v3 = vpack.c.bf16 %v2426_v9, %v2424_v40  ;;  %v1941_v55 = vpop.f32.mrf.mxu1 }
 0x364   : > { %3095 = vmatmul.msk.bf16.gmra.mxu3 %vm643_vm0, %v2147_v8  ;;  %3138 = vmatmul.msk.bf16.gmra.mxu1 %vm643_vm0, %v2440_v3 }
 0x367   : > { %v1636_v35 = vpop.f32.mrf.mxu3 }
 0x368   : > { %v1664_v58 = vadd.f32 %v1636_v35, %v4371_v53 }
 0x369   : > { %v2124_v4 = vpop.f32.mrf.mxu2 }
 0x36a   : > { %v4467_v1 = vadd.f32 %v1926_v28, %v1664_v58 }
 0x36f   : > { %v1638_v30 = vpop.f32.mrf.mxu3 }
 0x370   : > { %v1665_v49 = vadd.f32 %v1638_v30, %v4385_v61  ;;  %v1943_v61 = vpop.f32.mrf.mxu1 }
 0x371   : > { %v2126_v34 = vpop.f32.mrf.mxu2 }
 0x372   : > { %v2148_v39 = vpack.c.bf16 %v2126_v34, %v2124_v4  ;;  %v4471_v13 = vadd.f32 %v1928_v50, %v1665_v49 }
 0x374   : > { %3096 = vmatmul.msk.bf16.gmra.mxu3 %vm643_vm0, %v2148_v39 }
 0x377   : > { %v1641_v32 = vpop.f32.mrf.mxu3 }
 0x378   : > { %v1666_v53 = vadd.f32 %v1641_v32, %v4393_v15  ;;  %v2486_v15 = vpop.f32.mrf.mxu1 }
 0x379   : > { %v2129_v43 = vpop.f32.mrf.mxu2 }
 0x37a   : > { %v4475_v5 = vadd.f32 %v1931_v59, %v1666_v53 }
 0x37f   : > { %v1643_v12 = vpop.f32.mrf.mxu3 }
 0x380   : > { %v1667_v21 = vadd.f32 %v1643_v12, %v4405_v0  ;;  %v2488_v2 = vpop.f32.mrf.mxu1 }
 0x381   : > { %v2131_v10 = vpop.f32.mrf.mxu2 }
 0x382   : > { %v2149_v18 = vpack.c.bf16 %v2131_v10, %v2129_v43  ;;  %v4478_v29 = vadd.f32 %v1933_v42, %v1667_v21 }
 0x384   : > { %3097 = vmatmul.msk.bf16.gmra.mxu3 %vm643_vm0, %v2149_v18 }
 0x387   : > { %v1646_v28 = vpop.f32.mrf.mxu3 }
 0x388   : > { %v1668_v17 = vadd.f32 %v1646_v28, %v4411_v46  ;;  %v2491_v19 = vpop.f32.mrf.mxu1 }
 0x389   : > { %v2134_v14 = vpop.f32.mrf.mxu2 }
 0x38a   : > { %v4482_v7 = vadd.f32 %v1936_v38, %v1668_v17 }
 0x38f   : > { %v1648_v47 = vpop.f32.mrf.mxu3 }
 0x390   : > { %v1669_v27 = vadd.f32 %v1648_v47, %v4417_v25  ;;  %v2493_v11 = vpop.f32.mrf.mxu1 }
 0x391   : > { %v2136_v6 = vpop.f32.mrf.mxu2 }
 0x392   : > { %v2150_v50 = vpack.c.bf16 %v2136_v6, %v2134_v14  ;;  %v4485_v0 = vadd.f32 %v1938_v63, %v1669_v27 }
 0x394   : > { %3098 = vmatmul.msk.bf16.gmra.mxu3 %vm643_vm0, %v2150_v50 }
 0x397   : > { %v1651_v36 = vpop.f32.mrf.mxu3 }
 0x398   : > { %v1670_v56 = vadd.f32 %v1651_v36, %v4422_v22 }
 0x39a   : > { %v4489_v24 = vadd.f32 %v1941_v55, %v1670_v56 }
 0x39f   : > { %v1653_v46 = vpop.f32.mrf.mxu3 }
 0x3a0   : > { %v1671_v52 = vadd.f32 %v1653_v46, %v4428_v23 }
 0x3a2   : > { %v4492_v60 = vadd.f32 %v1943_v61, %v1671_v52 }
 0x3a7   : > { %v2196_v59 = vpop.f32.mrf.mxu3 }
 0x3a8   : > { %v2236_v25 = vadd.f32 %v2196_v59, %v4433_v44  ;;  %v2496_v44 = vpop.f32.mrf.mxu1 }
 0x3aa   : > { %v2526_v41 = vadd.f32 %v2486_v15, %v2236_v25 }
 0x3ac   : > { %v4501_v22 = vadd.f32 %v4498_v31, %v2526_v41 }
 0x3ae   : > { %2562 = vmax.xlane.f32.xlu0 %v4501_v22 }
 0x3af   : > { %v2198_v54 = vpop.f32.mrf.mxu3 }
 0x3b0   : > { %v2237_v23 = vadd.f32 %v2198_v54, %v4438_v16  ;;  %v2498_v35 = vpop.f32.mrf.mxu1 }
 0x3b2   : > { %v2527_v42 = vadd.f32 %v2488_v2, %v2237_v23 }
 0x3b4   : > { %v4506_v62 = vadd.f32 %v4498_v31, %v2527_v42 }
 0x3b6   : > { %2564 = vmax.xlane.f32.xlu1 %v4506_v62 }
 0x3b7   : > { %v2201_v51 = vpop.f32.mrf.mxu3 }
 0x3b8   : > { %v2238_v40 = vadd.f32 %v2201_v51, %v4444_v48  ;;  %v2501_v48 = vpop.f32.mrf.mxu1 }
 0x3ba   : > { %v2528_v8 = vadd.f32 %v2491_v19, %v2238_v40 }
 0x3bc   : > { %v4511_v38 = vadd.f32 %v4498_v31, %v2528_v8 }
 0x3be   : > { %2566 = vmax.xlane.f32.xlu2 %v4511_v38 }
 0x3bf   : > { %v2203_v58 = vpop.f32.mrf.mxu3 }
 0x3c0   : > { %v2239_v16 = vadd.f32 %v2203_v58, %v4448_v45  ;;  %v2503_v32 = vpop.f32.mrf.mxu1 }
 0x3c2   : > { %v2529_v4 = vadd.f32 %v2493_v11, %v2239_v16 }
 0x3c4   : > { %v4516_v9 = vadd.f32 %v4498_v31, %v2529_v4 }
 0x3c6   : > { %2568 = vmax.xlane.f32.xlu2 %v4516_v9 }
 0x3c7   : > { %v2206_v3 = vpop.f32.mrf.mxu3 }
 0x3c8   : > { %v2240_v30 = vadd.f32 %v2206_v3, %v4452_v37  ;;  %v2506_v21 = vpop.f32.mrf.mxu1 }
 0x3ca   : > { %v2530_v63 = vadd.f32 %v2496_v44, %v2240_v30 }
 0x3cc   : > { %v4521_v49 = vadd.f32 %v4498_v31, %v2530_v63 }
 0x3ce   : > { %2570 = vmax.xlane.f32.xlu0 %v4521_v49 }
 0x3cf   : > { %v2208_v34 = vpop.f32.mrf.mxu3 }
 0x3d0   : > { %v2241_v39 = vadd.f32 %v2208_v34, %v4456_v57  ;;  %v1953_v57 = vadd.f32 %v4440_v33, %v4463_v26  ;;  %v2508_v17 = vpop.f32.mrf.mxu1 }
 0x3d2   : > { %v2531_v45 = vadd.f32 %v2498_v35, %v2241_v39 }
 0x3d4   : > { %v4526_v53 = vadd.f32 %v4498_v31, %v2531_v45 }
 0x3d6   : > { %2572 = vmax.xlane.f32.xlu1 %v4526_v53 }
 0x3d7   : > { %v2211_v55 = vpop.f32.mrf.mxu3 }
 0x3d8   : > { %v2242_v37 = vadd.f32 %v2211_v55, %v4460_v20  ;;  %v2511_v26 = vpop.f32.mrf.mxu1 }
 0x3da   : > { %v2532_v43 = vadd.f32 %v2501_v48, %v2242_v37 }
 0x3dc   : > { %v4531_v12 = vadd.f32 %v4498_v31, %v2532_v43 }
 0x3de   : > { %2574 = vmax.xlane.f32.xlu2 %v4531_v12 }
 0x3df   : > { %v2213_v10 = vpop.f32.mrf.mxu3 }
 0x3e0   : > { %v2243_v18 = vadd.f32 %v2213_v10, %v1953_v57  ;;  %v2513_v56 = vpop.f32.mrf.mxu1 }
 0x3e2   : > { %v2533_v61 = vadd.f32 %v2503_v32, %v2243_v18 }
 0x3e4   : > { %v4537_v28 = vadd.f32 %v4498_v31, %v2533_v61 }
 0x3e6   : > { %2576 = vmax.xlane.f32.xlu0 %v4537_v28 }
 0x3e7   : > { %v2216_v20 = vpop.f32.mrf.mxu3 }
 0x3e8   : > { %v2244_v14 = vadd.f32 %v2216_v20, %v4467_v1  ;;  %v2516_v25 = vpop.f32.mrf.mxu1 }
 0x3ea   : > { %v2534_v15 = vadd.f32 %v2506_v21, %v2244_v14 }
 0x3ec   : > { %v4542_v47 = vadd.f32 %v4498_v31, %v2534_v15 }
 0x3ee   : > { %2578 = vmax.xlane.f32.xlu1 %v4542_v47 }
 0x3ef   : > { %v2218_v27 = vpop.f32.mrf.mxu3 }
 0x3f0   : > { %v2245_v33 = vadd.f32 %v2218_v27, %v4471_v13  ;;  %v2518_v23 = vpop.f32.mrf.mxu1 }
 0x3f2   : > { %v2535_v6 = vadd.f32 %v2508_v17, %v2245_v33 }
 0x3f4   : > { %v4547_v50 = vadd.f32 %v4498_v31, %v2535_v6 }
 0x3f6   : > { %2580 = vmax.xlane.f32.xlu2 %v4547_v50 }
 0x3f7   : > { %v2221_v2 = vpop.f32.mrf.mxu3 }
 0x3f8   : > { %v2246_v36 = vadd.f32 %v2221_v2, %v4475_v5  ;;  %v2521_v40 = vpop.f32.mrf.mxu1 }
 0x3fa   : > { %v2536_v1 = vadd.f32 %v2511_v26, %v2246_v36 }
 0x3fc   : > { %v4552_v46 = vadd.f32 %v4498_v31, %v2536_v1 }
 0x3fe   : > { %2582 = vmax.xlane.f32.xlu0 %v4552_v46 }
 0x3ff   : > { %v2223_v52 = vpop.f32.mrf.mxu3 }
 0x400   : > { %v2247_v13 = vadd.f32 %v2223_v52, %v4478_v29 }
 0x402   : > { %v2537_v19 = vadd.f32 %v2513_v56, %v2247_v13 }
 0x404   : > { %v4557_v59 = vadd.f32 %v4498_v31, %v2537_v19 }
 0x406   : > { %2584 = vmax.xlane.f32.xlu1 %v4557_v59 }
 0x407   : > { %v2226_v41 = vpop.f32.mrf.mxu3 }
 0x408   : > { %v2248_v5 = vadd.f32 %v2226_v41, %v4482_v7 }
 0x40a   : > { %v2538_v11 = vadd.f32 %v2516_v25, %v2248_v5 }
 0x40c   : > { %v4562_v54 = vadd.f32 %v4498_v31, %v2538_v11 }
 0x40e   : > { %2586 = vmax.xlane.f32.xlu2 %v4562_v54 }
 0x40f   : > { %v2228_v42 = vpop.f32.mrf.mxu3 }
 0x410   : > { %v2249_v29 = vadd.f32 %v2228_v42, %v4485_v0  ;;  %v2523_v0 = vpop.f32.mrf.mxu1 }
 0x412   : > { %v2539_v44 = vadd.f32 %v2518_v23, %v2249_v29 }
 0x414   : > { %v4567_v51 = vadd.f32 %v4498_v31, %v2539_v44 }
 0x416   : > { %2588 = vmax.xlane.f32.xlu0 %v4567_v51 }
 0x417   : > { %v2231_v8 = vpop.f32.mrf.mxu3 }
 0x418   : > { %v2250_v7 = vadd.f32 %v2231_v8, %v4489_v24 }
 0x41a   : > { %v2540_v35 = vadd.f32 %v2521_v40, %v2250_v7 }
 0x41c   : > { %v4572_v58 = vadd.f32 %v4498_v31, %v2540_v35 }
 0x41e   : > { %2590 = vmax.xlane.f32.xlu1 %v4572_v58 }
 0x41f   : > { %v2233_v16 = vpop.f32.mrf.mxu3 }
 0x420   : > { %v2251_v4 = vadd.f32 %v2233_v16, %v4492_v60 }
 0x421   : > { %v2563_v3 = vpop.xlane.xlu0 %2562 }
 0x422   : > { %v2541_v30 = vadd.f32 %v2523_v0, %v2251_v4  ;;  %v4577_v48 = vsub.f32 %v4501_v22, %v2563_v3 }
 0x424   : > { %v2610_v63 = vmul.f32 1.442695, %v4577_v48  ;;  %v4581_v34 = vadd.f32 %v4498_v31, %v2541_v30 }
 0x426   : > { %3248 = vpow2.f32 %v2610_v63  ;;  %2592 = vmax.xlane.f32.xlu2 %v4581_v34 }
 0x429   : > { %v2565_v24 = vpop.xlane.xlu1 %2564 }
 0x42a   : > { %v4585_v39 = vsub.f32 %v4506_v62, %v2565_v24 }
 0x42c   : > { %v3249_v45 = vpop.eup %3248  ;;  %v2612_v60 = vmul.f32 1.442695, %v4585_v39 }
 0x42d   : > { %2642 = vadd.xlane.f32.xlu0 %v3249_v45 }
 0x42e   : > { %3250 = vpow2.f32 %v2612_v60 }
 0x431   : > { %v2567_v32 = vpop.xlane.xlu2 %2566 }
 0x432   : > { %v4589_v22 = vsub.f32 %v4511_v38, %v2567_v32 }
 0x434   : > { %v3251_v55 = vpop.eup %3250  ;;  %v2614_v31 = vmul.f32 1.442695, %v4589_v22 }
 0x435   : > { %2644 = vadd.xlane.f32.xlu1 %v3251_v55 }
 0x436   : > { %3252 = vpow2.f32 %v2614_v31 }
 0x439   : > { %v2569_v37 = vpop.xlane.xlu2 %2568 }
 0x43a   : > { %v4593_v43 = vsub.f32 %v4516_v9, %v2569_v37 }
 0x43c   : > { %v3253_v62 = vpop.eup %3252  ;;  %v2616_v21 = vmul.f32 1.442695, %v4593_v43 }
 0x43d   : > { %2646 = vadd.xlane.f32.xlu2 %v3253_v62 }
 0x43e   : > { %3254 = vpow2.f32 %v2616_v21 }
 0x441   : > { %v2571_v57 = vpop.xlane.xlu0 %2570 }
 0x442   : > { %v4597_v10 = vsub.f32 %v4521_v49, %v2571_v57 }
 0x444   : > { %v3255_v38 = vpop.eup %3254  ;;  %v2618_v18 = vmul.f32 1.442695, %v4597_v10 }
 0x445   : > { %2648 = vadd.xlane.f32.xlu0 %v3255_v38 }
 0x446   : > { %3256 = vpow2.f32 %v2618_v18 }
 0x449   : > { %v2573_v61 = vpop.xlane.xlu1 %2572 }
 0x44a   : > { %v4601_v17 = vsub.f32 %v4526_v53, %v2573_v61 }
 0x44c   : > { %v3257_v9 = vpop.eup %3256  ;;  %v2620_v20 = vmul.f32 1.442695, %v4601_v17 }
 0x44d   : > { %2650 = vadd.xlane.f32.xlu1 %v3257_v9 }
 0x44e   : > { %3258 = vpow2.f32 %v2620_v20 }
 0x451   : > { %v2575_v14 = vpop.xlane.xlu2 %2574 }
 0x452   : > { %v4605_v15 = vsub.f32 %v4531_v12, %v2575_v14 }
 0x454   : > { %v3259_v49 = vpop.eup %3258  ;;  %v2622_v27 = vmul.f32 1.442695, %v4605_v15 }
 0x455   : > { %2652 = vadd.xlane.f32.xlu2 %v3259_v49 }
 0x456   : > { %3260 = vpow2.f32 %v2622_v27 }
 0x459   : > { %v2577_v33 = vpop.xlane.xlu0 %2576 }
 0x45a   : > { %v4609_v26 = vsub.f32 %v4537_v28, %v2577_v33 }
 0x45c   : > { %v3261_v53 = vpop.eup %3260  ;;  %v2624_v6 = vmul.f32 1.442695, %v4609_v26 }
 0x45d   : > { %2654 = vadd.xlane.f32.xlu0 %v3261_v53 }
 0x45e   : > { %3262 = vpow2.f32 %v2624_v6 }
 0x461   : > { %v2579_v2 = vpop.xlane.xlu1 %2578 }
 0x462   : > { %v4613_v36 = vsub.f32 %v4542_v47, %v2579_v2 }
 0x464   : > { %v3263_v12 = vpop.eup %3262  ;;  %v2626_v1 = vmul.f32 1.442695, %v4613_v36 }
 0x465   : > { %2656 = vadd.xlane.f32.xlu1 %v3263_v12 }
 0x466   : > { %3264 = vpow2.f32 %v2626_v1 }
 0x469   : > { %v2581_v56 = vpop.xlane.xlu2 %2580 }
 0x46a   : > { %v4617_v52 = vsub.f32 %v4547_v50, %v2581_v56 }
 0x46c   : > { %v3265_v28 = vpop.eup %3264  ;;  %v2628_v13 = vmul.f32 1.442695, %v4617_v52 }
 0x46d   : > { %2658 = vadd.xlane.f32.xlu2 %v3265_v28 }
 0x46e   : > { %3266 = vpow2.f32 %v2628_v13 }
 0x471   : > { %v2583_v19 = vpop.xlane.xlu0 %2582 }
 0x472   : > { %v4621_v25 = vsub.f32 %v4552_v46, %v2583_v19 }
 0x474   : > { %v3267_v47 = vpop.eup %3266  ;;  %v2630_v41 = vmul.f32 1.442695, %v4621_v25 }
 0x475   : > { %2660 = vadd.xlane.f32.xlu0 %v3267_v47 }
 0x476   : > { %3268 = vpow2.f32 %v2630_v41 }
 0x479   : > { %v2585_v5 = vpop.xlane.xlu1 %2584 }
 0x47a   : > { %v4625_v11 = vsub.f32 %v4557_v59, %v2585_v5 }
 0x47c   : > { %v3269_v50 = vpop.eup %3268  ;;  %v2632_v23 = vmul.f32 1.442695, %v4625_v11 }
 0x47d   : > { %2662 = vadd.xlane.f32.xlu1 %v3269_v50 }
 0x47e   : > { %3270 = vpow2.f32 %v2632_v23 }
 0x481   : > { %v2587_v42 = vpop.xlane.xlu2 %2586 }
 0x482   : > { %v4629_v29 = vsub.f32 %v4562_v54, %v2587_v42 }
 0x484   : > { %v3271_v46 = vpop.eup %3270  ;;  %v2634_v44 = vmul.f32 1.442695, %v4629_v29 }
 0x485   : > { %2664 = vadd.xlane.f32.xlu2 %v3271_v46 }
 0x486   : > { %3272 = vpow2.f32 %v2634_v44 }
 0x489   : > { %v2589_v40 = vpop.xlane.xlu0 %2588 }
 0x48a   : > { %v4633_v8 = vsub.f32 %v4567_v51, %v2589_v40 }
 0x48c   : > { %v3273_v59 = vpop.eup %3272  ;;  %v2636_v7 = vmul.f32 1.442695, %v4633_v8 }
 0x48d   : > { %2666 = vadd.xlane.f32.xlu0 %v3273_v59 }
 0x48e   : > { %3274 = vpow2.f32 %v2636_v7 }
 0x491   : > { %v2591_v35 = vpop.xlane.xlu1 %2590 }
 0x492   : > { %v4637_v16 = vsub.f32 %v4572_v58, %v2591_v35 }
 0x494   : > { %v3275_v54 = vpop.eup %3274  ;;  %v2638_v4 = vmul.f32 1.442695, %v4637_v16 }
 0x495   : > { %2668 = vadd.xlane.f32.xlu1 %v3275_v54 }
 0x496   : > { %3276 = vpow2.f32 %v2638_v4 }
 0x499   : > { %v2593_v0 = vpop.xlane.xlu2 %2592 }
 0x49a   : > { %v4641_v3 = vsub.f32 %v4581_v34, %v2593_v0 }
 0x49c   : > { %v3277_v51 = vpop.eup %3276  ;;  %v2640_v30 = vmul.f32 1.442695, %v4641_v3 }
 0x49d   : > { %2670 = vadd.xlane.f32.xlu2 %v3277_v51 }
 0x49e   : > { %3278 = vpow2.f32 %v2640_v30 }
 0x4a0   : > { %v2643_v63 = vpop.xlane.xlu0 %2642 }
 0x4a1   : > { %3280 = vlog2.f32 %v2643_v63 }
 0x4a4   : > { %v3279_v24 = vpop.eup %3278 }
 0x4a5   : > { %2672 = vadd.xlane.f32.xlu0 %v3279_v24 }
 0x4a7   : > { %v3281_v58 = vpop.eup %3280 }
 0x4a8   : > { %v2675_v45 = vmul.f32 0.6931472, %v3281_v58  ;;  %v2645_v60 = vpop.xlane.xlu1 %2644 }
 0x4a9   : > { %3282 = vlog2.f32 %v2645_v60 }
 0x4aa   : > { %v2706_v34 = vsub.f32 %v4577_v48, %v2675_v45 }
 0x4ac   : > { %2722 = vst [vmem:[%s4649_s20] sm:$0xff] %v2706_v34 }
 0x4af   : > { %v3283_v32 = vpop.eup %3282 }
 0x4b0   : > { %v2677_v55 = vmul.f32 0.6931472, %v3283_v32  ;;  %v2647_v31 = vpop.xlane.xlu2 %2646 }
 0x4b1   : > { %3284 = vlog2.f32 %v2647_v31 }
 0x4b2   : > { %v2707_v37 = vsub.f32 %v4585_v39, %v2677_v55 }
 0x4b4   : > { %2723 = vst [vmem:[%s4649_s20 + $0x8] sm:$0xff] %v2707_v37 }
 0x4b7   : > { %v3285_v62 = vpop.eup %3284 }
 0x4b8   : > { %v2679_v21 = vmul.f32 0.6931472, %v3285_v62  ;;  %v2649_v57 = vpop.xlane.xlu0 %2648 }
 0x4b9   : > { %3286 = vlog2.f32 %v2649_v57 }
 0x4ba   : > { %v2708_v38 = vsub.f32 %v4589_v22, %v2679_v21 }
 0x4bc   : > { %2724 = vst [vmem:[%s4649_s20 + $0x10] sm:$0xff] %v2708_v38 }
 0x4bf   : > { %v3287_v18 = vpop.eup %3286 }
 0x4c0   : > { %v2681_v61 = vmul.f32 0.6931472, %v3287_v18  ;;  %v2651_v48 = vpop.xlane.xlu1 %2650 }
 0x4c1   : > { %3288 = vlog2.f32 %v2651_v48 }
 0x4c2   : > { %v2709_v9 = vsub.f32 %v4593_v43, %v2681_v61 }
 0x4c4   : > { %2725 = vst [vmem:[%s4649_s20 + $0x18] sm:$0xff] %v2709_v9 }
 0x4c7   : > { %v3289_v20 = vpop.eup %3288 }
 0x4c8   : > { %v2683_v14 = vmul.f32 0.6931472, %v3289_v20  ;;  %v2653_v39 = vpop.xlane.xlu2 %2652 }
 0x4c9   : > { %3290 = vlog2.f32 %v2653_v39 }
 0x4ca   : > { %v2710_v49 = vsub.f32 %v4597_v10, %v2683_v14 }
 0x4cc   : > { %2726 = vst [vmem:[%s4649_s20 + $0x20] sm:$0xff] %v2710_v49 }
 0x4cf   : > { %v3291_v27 = vpop.eup %3290 }
 0x4d0   : > { %v2685_v33 = vmul.f32 0.6931472, %v3291_v27  ;;  %v2655_v22 = vpop.xlane.xlu0 %2654 }
 0x4d1   : > { %3292 = vlog2.f32 %v2655_v22 }
 0x4d2   : > { %v2711_v53 = vsub.f32 %v4601_v17, %v2685_v33 }
 0x4d4   : > { %2727 = vst [vmem:[%s4649_s20 + $0x28] sm:$0xff] %v2711_v53 }
 0x4d7   : > { %v3293_v6 = vpop.eup %3292 }
 0x4d8   : > { %v2687_v2 = vmul.f32 0.6931472, %v3293_v6  ;;  %v2657_v43 = vpop.xlane.xlu1 %2656 }
 0x4d9   : > { %3294 = vlog2.f32 %v2657_v43 }
 0x4da   : > { %v2712_v12 = vsub.f32 %v4605_v15, %v2687_v2 }
 0x4dc   : > { %2728 = vst [vmem:[%s4649_s20 + $0x30] sm:$0xff] %v2712_v12 }
 0x4df   : > { %v3295_v1 = vpop.eup %3294 }
 0x4e0   : > { %v2689_v56 = vmul.f32 0.6931472, %v3295_v1  ;;  %v2659_v10 = vpop.xlane.xlu2 %2658 }
 0x4e1   : > { %3296 = vlog2.f32 %v2659_v10 }
 0x4e2   : > { %v2713_v28 = vsub.f32 %v4609_v26, %v2689_v56 }
 0x4e4   : > { %2729 = vst [vmem:[%s4649_s20 + $0x38] sm:$0xff] %v2713_v28 }
 0x4e7   : > { %v3297_v13 = vpop.eup %3296 }
 0x4e8   : > { %v2691_v19 = vmul.f32 0.6931472, %v3297_v13  ;;  %v2661_v17 = vpop.xlane.xlu0 %2660 }
 0x4e9   : > { %3298 = vlog2.f32 %v2661_v17 }
 0x4ea   : > { %v2714_v47 = vsub.f32 %v4613_v36, %v2691_v19 }
 0x4ec   : > { %2730 = vst [vmem:[%s4649_s20 + $0x40] sm:$0xff] %v2714_v47 }
 0x4ef   : > { %v3299_v41 = vpop.eup %3298 }
 0x4f0   : > { %v2693_v5 = vmul.f32 0.6931472, %v3299_v41  ;;  %v2663_v15 = vpop.xlane.xlu1 %2662 }
 0x4f1   : > { %3300 = vlog2.f32 %v2663_v15 }
 0x4f2   : > { %v2715_v50 = vsub.f32 %v4617_v52, %v2693_v5 }
 0x4f4   : > { %2731 = vst [vmem:[%s4649_s20 + $0x48] sm:$0xff] %v2715_v50 }
 0x4f7   : > { %v3301_v23 = vpop.eup %3300 }
 0x4f8   : > { %v2695_v42 = vmul.f32 0.6931472, %v3301_v23  ;;  %v2665_v26 = vpop.xlane.xlu2 %2664 }
 0x4f9   : > { %3302 = vlog2.f32 %v2665_v26 }
 0x4fa   : > { %v2716_v46 = vsub.f32 %v4621_v25, %v2695_v42 }
 0x4fc   : > { %2732 = vst [vmem:[%s4649_s20 + $0x50] sm:$0xff] %v2716_v46 }
 0x4ff   : > { %v3303_v44 = vpop.eup %3302 }
 0x500   : > { %v2697_v40 = vmul.f32 0.6931472, %v3303_v44  ;;  %v2667_v36 = vpop.xlane.xlu0 %2666 }
 0x501   : > { %3304 = vlog2.f32 %v2667_v36 }
 0x502   : > { %v2717_v59 = vsub.f32 %v4625_v11, %v2697_v40 }
 0x504   : > { %2733 = vst [vmem:[%s4649_s20 + $0x58] sm:$0xff] %v2717_v59 }
 0x507   : > { %v3305_v7 = vpop.eup %3304 }
 0x508   : > { %v2699_v35 = vmul.f32 0.6931472, %v3305_v7  ;;  %v2669_v52 = vpop.xlane.xlu1 %2668 }
 0x509   : > { %3306 = vlog2.f32 %v2669_v52 }
 0x50a   : > { %v2718_v54 = vsub.f32 %v4629_v29, %v2699_v35 }
 0x50c   : > { %2734 = vst [vmem:[%s4649_s20 + $0x60] sm:$0xff] %v2718_v54 }
 0x50f   : > { %v3307_v4 = vpop.eup %3306 }
 0x510   : > { %v2701_v25 = vmul.f32 0.6931472, %v3307_v4  ;;  %v2671_v0 = vpop.xlane.xlu2 %2670 }
 0x511   : > { %3308 = vlog2.f32 %v2671_v0 }
 0x512   : > { %v2719_v51 = vsub.f32 %v4633_v8, %v2701_v25 }
 0x514   : > { %2735 = vst [vmem:[%s4649_s20 + $0x68] sm:$0xff] %v2719_v51 }
 0x517   : > { %v3309_v30 = vpop.eup %3308 }
 0x518   : > { %v2703_v63 = vmul.f32 0.6931472, %v3309_v30  ;;  %v2673_v11 = vpop.xlane.xlu0 %2672 }
 0x519   : > { %3310 = vlog2.f32 %v2673_v11 }
 0x51a   : > { %v2720_v24 = vsub.f32 %v4637_v16, %v2703_v63 }
 0x51c   : > { %2736 = vst [vmem:[%s4649_s20 + $0x70] sm:$0xff] %v2720_v24 }
 0x51f   : > { %v3311_v58 = vpop.eup %3310 }
 0x520   : > { %v2705_v45 = vmul.f32 0.6931472, %v3311_v58 }
 0x522   : > { %v2721_v29 = vsub.f32 %v4641_v3, %v2705_v45 }
 0x524   : > { %2737 = vst [vmem:[%s4649_s20 + $0x78] sm:$0xff] %v2721_v29 }
 0x525 PF: > { %s14_s15 = sadd.s32 1, %s3334_s15  }
 0x526   : > { %p11_p4 = scmp.ge.s32.totalorder %s14_s15, 4  }
 0x528   :  { %13 = sbr.rel (!%p11_p4) target bundleno = 1 (0x1), region = 66 }

</bundles_post_ra>
